<compile_context>
chip_gen: v7x
topology: tpu7x:2x2x1
jax: 0.10.0
libtpu: 0.0.40
codegen_flags: <defaults>
</compile_context>

<pallas_src>
import jax
import jax.numpy as jnp
from jax import lax
from jax.experimental import pallas as pl
from jax.experimental.pallas import tpu as pltpu

# ---- model hyperparameters (small, consistent with the module) ----
INPUT_SIZE = 16
HIDDEN_SIZE = 32
NUM_LAYERS = 2
OUTPUT_SIZE = 4
BATCH = 2
SEQ = 8

BATCH_PAD = 8     # pad batch to the f32 sublane width -> unmasked vreg ops
OUT_PAD = 128     # lane-dense output block -> unmasked vst


def make_lstm_fc_kernel(num_layers, hidden_size, seq_len, batch_pad):
    """Builds the fused LSTM(num_layers) + FC Pallas kernel.

    Kernel ref order:
      x_ref (T*Bp, I),
      for each layer l: w_ih_t (in_dim, 4H), w_hh_t (H, 4H), bias (1, 4H),
      w_fc_t (H, OUT_PAD), b_fc (1, OUT_PAD),
      out_ref (Bp, OUT_PAD)
    Weights are passed pre-transposed so the kernel does plain row-major
    matmuls on the MXU. bias = b_ih + b_hh (PyTorch gate order i, f, g, o).
    """
    H = hidden_size
    T = seq_len
    Bp = batch_pad

    def kernel(*args):
        x_ref = args[0]
        idx = 1
        layer_refs = []
        for _ in range(num_layers):
            layer_refs.append((args[idx], args[idx + 1], args[idx + 2]))
            idx += 3
        w_fc_ref = args[idx]
        b_fc_ref = args[idx + 1]
        out_ref = args[idx + 2]

        # ---- hoisted layer-0 input projection: one batched matmul ----
        w_ih0_ref, _, b0_ref = layer_refs[0]
        xproj0 = (
            jnp.dot(x_ref[...], w_ih0_ref[...], preferred_element_type=jnp.float32)
            + b0_ref[...]
        )                                          # (T*Bp, 4H)

        # Time-invariant weights loaded once, outside the recurrence.
        w_hh = [layer_refs[l][1][...] for l in range(num_layers)]
        w_ih = [None] + [layer_refs[l][0][...] for l in range(1, num_layers)]
        bias = [None] + [layer_refs[l][2][...] for l in range(1, num_layers)]

        # Lane mask selecting the g-gate block (lanes [2H, 3H)) of a (Bp, 4H) tile.
        lane = lax.broadcasted_iota(jnp.int32, (Bp, 4 * H), 1)
        g_mask = (lane >= 2 * H) & (lane < 3 * H)

        def cell(gates, c):
            # One full-width sigmoid + one full-width tanh; g-gate picked by mask.
            act = jnp.where(g_mask, jnp.tanh(gates), jax.nn.sigmoid(gates))
            i_g = act[:, 0:H]
            f_g = act[:, H:2 * H]
            g_g = act[:, 2 * H:3 * H]
            o_g = act[:, 3 * H:4 * H]
            c_new = f_g * c + i_g * g_g
            h_new = o_g * jnp.tanh(c_new)
            return h_new, c_new

        h = [jnp.zeros((Bp, H), jnp.float32) for _ in range(num_layers)]
        c = [jnp.zeros((Bp, H), jnp.float32) for _ in range(num_layers)]

        # Fused multi-layer recurrence, statically unrolled (T is a Python const).
        for t in range(T):
            gates = xproj0[t * Bp:(t + 1) * Bp, :] + jnp.dot(
                h[0], w_hh[0], preferred_element_type=jnp.float32)
            h[0], c[0] = cell(gates, c[0])
            for l in range(1, num_layers):
                gates = (
                    jnp.dot(h[l - 1], w_ih[l], preferred_element_type=jnp.float32)
                    + jnp.dot(h[l], w_hh[l], preferred_element_type=jnp.float32)
                    + bias[l]
                )
                h[l], c[l] = cell(gates, c[l])

        # fc(out[:, -1, :]) == fc(h_T of the last layer); lane-dense padded output.
        out = jnp.dot(h[-1], w_fc_ref[...], preferred_element_type=jnp.float32) \
              + b_fc_ref[...]
        out_ref[...] = out.astype(out_ref.dtype)

    return kernel


@jax.jit
def lstm_model_pallas(x, params):
    """x: (B, T, INPUT_SIZE) float32 -> (B, OUTPUT_SIZE) float32."""
    B, T, I = x.shape
    # time-major + sublane-pad the batch to 8 (pad rows are zero and sliced off)
    x_tm = jnp.transpose(x, (1, 0, 2)).astype(jnp.float32)            # (T, B, I)
    x_pad = jnp.zeros((T, BATCH_PAD, I), jnp.float32).at[:, :B, :].set(x_tm)
    x_flat = x_pad.reshape(T * BATCH_PAD, I)                          # (T*Bp, I)

    flat = []
    for (w_ih, w_hh, b_ih, b_hh) in params["layers"]:
        flat += [w_ih.T, w_hh.T, (b_ih + b_hh)[None, :]]

    # Lane-dense FC: pad OUTPUT_SIZE -> 128 columns with zeros.
    w_fc_pad = jnp.zeros((HIDDEN_SIZE, OUT_PAD), jnp.float32) \
                  .at[:, :OUTPUT_SIZE].set(params["w_fc"].T)
    b_fc_pad = jnp.zeros((1, OUT_PAD), jnp.float32) \
                  .at[0, :OUTPUT_SIZE].set(params["b_fc"])
    flat += [w_fc_pad, b_fc_pad]

    kernel = make_lstm_fc_kernel(NUM_LAYERS, HIDDEN_SIZE, T, BATCH_PAD)
    vmem = pl.BlockSpec(memory_space=pltpu.MemorySpace.VMEM)
    out = pl.pallas_call(
        kernel,
        out_shape=jax.ShapeDtypeStruct((BATCH_PAD, OUT_PAD), jnp.float32),
        in_specs=[vmem] * (1 + len(flat)),
        out_specs=vmem,
    )(x_flat, *flat)
    return out[:B, :OUTPUT_SIZE]


def init_params(key):
    """Deterministic init; same shapes/uniform range as PyTorch's default LSTM/Linear init."""
    k = 1.0 / (HIDDEN_SIZE ** 0.5)
    n_keys = NUM_LAYERS * 4 + 2
    keys = jax.random.split(key, n_keys)
    layers = []
    ki = 0
    for l in range(NUM_LAYERS):
        in_dim = INPUT_SIZE if l == 0 else HIDDEN_SIZE
        w_ih = jax.random.uniform(keys[ki + 0], (4 * HIDDEN_SIZE, in_dim),
                                  minval=-k, maxval=k, dtype=jnp.float32)
        w_hh = jax.random.uniform(keys[ki + 1], (4 * HIDDEN_SIZE, HIDDEN_SIZE),
                                  minval=-k, maxval=k, dtype=jnp.float32)
        b_ih = jax.random.uniform(keys[ki + 2], (4 * HIDDEN_SIZE,),
                                  minval=-k, maxval=k, dtype=jnp.float32)
        b_hh = jax.random.uniform(keys[ki + 3], (4 * HIDDEN_SIZE,),
                                  minval=-k, maxval=k, dtype=jnp.float32)
        layers.append((w_ih, w_hh, b_ih, b_hh))
        ki += 4
    w_fc = jax.random.uniform(keys[ki], (OUTPUT_SIZE, HIDDEN_SIZE),
                              minval=-k, maxval=k, dtype=jnp.float32)
    b_fc = jax.random.uniform(keys[ki + 1], (OUTPUT_SIZE,),
                              minval=-k, maxval=k, dtype=jnp.float32)
    return {"layers": layers, "w_fc": w_fc, "b_fc": b_fc}


def reference(x, params):
    """Pure-JAX reference matching torch.nn.LSTM (batch_first) + Linear semantics."""
    B = x.shape[0]
    h = [jnp.zeros((B, HIDDEN_SIZE), jnp.float32) for _ in range(NUM_LAYERS)]
    c = [jnp.zeros((B, HIDDEN_SIZE), jnp.float32) for _ in range(NUM_LAYERS)]
    for t in range(x.shape[1]):
        inp = x[:, t, :]
        for l, (w_ih, w_hh, b_ih, b_hh) in enumerate(params["layers"]):
            gates = inp @ w_ih.T + b_ih + h[l] @ w_hh.T + b_hh
            i_g, f_g, g_g, o_g = jnp.split(gates, 4, axis=-1)
            i_g = jax.nn.sigmoid(i_g)
            f_g = jax.nn.sigmoid(f_g)
            g_g = jnp.tanh(g_g)
            o_g = jax.nn.sigmoid(o_g)
            c[l] = f_g * c[l] + i_g * g_g
            h[l] = o_g * jnp.tanh(c[l])
            inp = h[l]
    return h[-1] @ params["w_fc"].T + params["b_fc"]


if __name__ == "__main__":
    key = jax.random.PRNGKey(0)
    pkey, xkey = jax.random.split(key)
    params = init_params(pkey)
    x = jax.random.normal(xkey, (BATCH, SEQ, INPUT_SIZE), dtype=jnp.float32)

    out = lstm_model_pallas(x, params)
    out = jax.block_until_ready(out)

    ref = reference(x, params)
    assert out.shape == (BATCH, OUTPUT_SIZE)
    assert jnp.allclose(out, ref, atol=1e-4, rtol=1e-4), (out, ref)
    print("KERNEL_OK")
</pallas_src>

<mosaic_0001>
module attributes {stable_mosaic.version = 11 : i64} {
  func.func @kernel(%arg0: memref<64x16xf32, #tpu.memory_space<vmem>>, %arg1: memref<16x128xf32, #tpu.memory_space<vmem>>, %arg2: memref<32x128xf32, #tpu.memory_space<vmem>>, %arg3: memref<1x128xf32, #tpu.memory_space<vmem>>, %arg4: memref<32x128xf32, #tpu.memory_space<vmem>>, %arg5: memref<32x128xf32, #tpu.memory_space<vmem>>, %arg6: memref<1x128xf32, #tpu.memory_space<vmem>>, %arg7: memref<32x128xf32, #tpu.memory_space<vmem>>, %arg8: memref<1x128xf32, #tpu.memory_space<vmem>>, %arg9: memref<8x128xf32, #tpu.memory_space<vmem>>) attributes {dimension_semantics = [], scalar_prefetch = 0 : i64, scratch_operands = 0 : i64, tpu.core_type = #tpu.core_type<tc>} {
    %c0 = arith.constant 0 : index
    %c0_0 = arith.constant 0 : index
    %0 = vector.load %arg0[%c0, %c0_0] : memref<64x16xf32, #tpu.memory_space<vmem>>, vector<64x16xf32>
    %c0_1 = arith.constant 0 : index
    %c0_2 = arith.constant 0 : index
    %1 = vector.load %arg1[%c0_1, %c0_2] : memref<16x128xf32, #tpu.memory_space<vmem>>, vector<16x128xf32>
    %cst = arith.constant dense<0.000000e+00> : vector<64x128xf32>
    %2 = tpu.matmul %0, %1, %cst {dimension_numbers = #tpu.dot_dimension_numbers<[1], [0], [0], [1], [0, 0, 1, 1], [], []>} : vector<64x16xf32>, vector<16x128xf32>, vector<64x128xf32> -> vector<64x128xf32>
    %c0_3 = arith.constant 0 : index
    %c0_4 = arith.constant 0 : index
    %3 = vector.load %arg3[%c0_3, %c0_4] : memref<1x128xf32, #tpu.memory_space<vmem>>, vector<1x128xf32>
    %4 = vector.broadcast %3 : vector<1x128xf32> to vector<64x128xf32>
    %5 = arith.addf %2, %4 : vector<64x128xf32>
    %c0_5 = arith.constant 0 : index
    %c0_6 = arith.constant 0 : index
    %6 = vector.load %arg2[%c0_5, %c0_6] : memref<32x128xf32, #tpu.memory_space<vmem>>, vector<32x128xf32>
    %c0_7 = arith.constant 0 : index
    %c0_8 = arith.constant 0 : index
    %7 = vector.load %arg5[%c0_7, %c0_8] : memref<32x128xf32, #tpu.memory_space<vmem>>, vector<32x128xf32>
    %c0_9 = arith.constant 0 : index
    %c0_10 = arith.constant 0 : index
    %8 = vector.load %arg4[%c0_9, %c0_10] : memref<32x128xf32, #tpu.memory_space<vmem>>, vector<32x128xf32>
    %c0_11 = arith.constant 0 : index
    %c0_12 = arith.constant 0 : index
    %9 = vector.load %arg6[%c0_11, %c0_12] : memref<1x128xf32, #tpu.memory_space<vmem>>, vector<1x128xf32>
    %10 = tpu.iota {dimensions = array<i32: 1>} : vector<8x128xi32>
    %c64_i32 = arith.constant 64 : i32
    %11 = vector.broadcast %c64_i32 : i32 to vector<8x128xi32>
    %12 = arith.cmpi sge, %10, %11 : vector<8x128xi32>
    %c96_i32 = arith.constant 96 : i32
    %13 = vector.broadcast %c96_i32 : i32 to vector<8x128xi32>
    %14 = arith.cmpi slt, %10, %13 : vector<8x128xi32>
    %15 = arith.andi %12, %14 : vector<8x128xi1>
    %cst_13 = arith.constant 0.000000e+00 : f32
    %16 = vector.broadcast %cst_13 : f32 to vector<8x32xf32>
    %cst_14 = arith.constant 0.000000e+00 : f32
    %17 = vector.broadcast %cst_14 : f32 to vector<8x32xf32>
    %cst_15 = arith.constant 0.000000e+00 : f32
    %18 = vector.broadcast %cst_15 : f32 to vector<8x32xf32>
    %cst_16 = arith.constant 0.000000e+00 : f32
    %19 = vector.broadcast %cst_16 : f32 to vector<8x32xf32>
    %20 = vector.extract_strided_slice %5 {offsets = [0, 0], sizes = [8, 128], strides = [1, 1]} : vector<64x128xf32> to vector<8x128xf32>
    %cst_17 = arith.constant dense<0.000000e+00> : vector<8x128xf32>
    %21 = tpu.matmul %16, %6, %cst_17 {dimension_numbers = #tpu.dot_dimension_numbers<[1], [0], [0], [1], [0, 0, 1, 1], [], []>} : vector<8x32xf32>, vector<32x128xf32>, vector<8x128xf32> -> vector<8x128xf32>
    %22 = arith.addf %20, %21 : vector<8x128xf32>
    %23 = math.tanh %22 : vector<8x128xf32>
    %24 = arith.negf %22 : vector<8x128xf32>
    %25 = math.exp %24 : vector<8x128xf32>
    %cst_18 = arith.constant 1.000000e+00 : f32
    %26 = vector.broadcast %cst_18 : f32 to vector<8x128xf32>
    %27 = arith.addf %26, %25 : vector<8x128xf32>
    %28 = arith.divf %26, %27 : vector<8x128xf32>
    %29 = arith.select %15, %23, %28 : vector<8x128xi1>, vector<8x128xf32>
    %30 = vector.extract_strided_slice %29 {offsets = [0, 0], sizes = [8, 32], strides = [1, 1]} : vector<8x128xf32> to vector<8x32xf32>
    %31 = vector.extract_strided_slice %29 {offsets = [0, 32], sizes = [8, 32], strides = [1, 1]} : vector<8x128xf32> to vector<8x32xf32>
    %32 = vector.extract_strided_slice %29 {offsets = [0, 64], sizes = [8, 32], strides = [1, 1]} : vector<8x128xf32> to vector<8x32xf32>
    %33 = vector.extract_strided_slice %29 {offsets = [0, 96], sizes = [8, 32], strides = [1, 1]} : vector<8x128xf32> to vector<8x32xf32>
    %34 = arith.mulf %31, %18 : vector<8x32xf32>
    %35 = arith.mulf %30, %32 : vector<8x32xf32>
    %36 = arith.addf %34, %35 : vector<8x32xf32>
    %37 = math.tanh %36 : vector<8x32xf32>
    %38 = arith.mulf %33, %37 : vector<8x32xf32>
    %cst_19 = arith.constant dense<0.000000e+00> : vector<8x128xf32>
    %39 = tpu.matmul %38, %8, %cst_19 {dimension_numbers = #tpu.dot_dimension_numbers<[1], [0], [0], [1], [0, 0, 1, 1], [], []>} : vector<8x32xf32>, vector<32x128xf32>, vector<8x128xf32> -> vector<8x128xf32>
    %cst_20 = arith.constant dense<0.000000e+00> : vector<8x128xf32>
    %40 = tpu.matmul %17, %7, %cst_20 {dimension_numbers = #tpu.dot_dimension_numbers<[1], [0], [0], [1], [0, 0, 1, 1], [], []>} : vector<8x32xf32>, vector<32x128xf32>, vector<8x128xf32> -> vector<8x128xf32>
    %41 = arith.addf %39, %40 : vector<8x128xf32>
    %42 = vector.broadcast %9 : vector<1x128xf32> to vector<8x128xf32>
    %43 = arith.addf %41, %42 : vector<8x128xf32>
    %44 = math.tanh %43 : vector<8x128xf32>
    %45 = arith.negf %43 : vector<8x128xf32>
    %46 = math.exp %45 : vector<8x128xf32>
    %cst_21 = arith.constant 1.000000e+00 : f32
    %47 = vector.broadcast %cst_21 : f32 to vector<8x128xf32>
    %48 = arith.addf %47, %46 : vector<8x128xf32>
    %49 = arith.divf %47, %48 : vector<8x128xf32>
    %50 = arith.select %15, %44, %49 : vector<8x128xi1>, vector<8x128xf32>
    %51 = vector.extract_strided_slice %50 {offsets = [0, 0], sizes = [8, 32], strides = [1, 1]} : vector<8x128xf32> to vector<8x32xf32>
    %52 = vector.extract_strided_slice %50 {offsets = [0, 32], sizes = [8, 32], strides = [1, 1]} : vector<8x128xf32> to vector<8x32xf32>
    %53 = vector.extract_strided_slice %50 {offsets = [0, 64], sizes = [8, 32], strides = [1, 1]} : vector<8x128xf32> to vector<8x32xf32>
    %54 = vector.extract_strided_slice %50 {offsets = [0, 96], sizes = [8, 32], strides = [1, 1]} : vector<8x128xf32> to vector<8x32xf32>
    %55 = arith.mulf %52, %19 : vector<8x32xf32>
    %56 = arith.mulf %51, %53 : vector<8x32xf32>
    %57 = arith.addf %55, %56 : vector<8x32xf32>
    %58 = math.tanh %57 : vector<8x32xf32>
    %59 = arith.mulf %54, %58 : vector<8x32xf32>
    %60 = vector.extract_strided_slice %5 {offsets = [8, 0], sizes = [8, 128], strides = [1, 1]} : vector<64x128xf32> to vector<8x128xf32>
    %cst_22 = arith.constant dense<0.000000e+00> : vector<8x128xf32>
    %61 = tpu.matmul %38, %6, %cst_22 {dimension_numbers = #tpu.dot_dimension_numbers<[1], [0], [0], [1], [0, 0, 1, 1], [], []>} : vector<8x32xf32>, vector<32x128xf32>, vector<8x128xf32> -> vector<8x128xf32>
    %62 = arith.addf %60, %61 : vector<8x128xf32>
    %63 = math.tanh %62 : vector<8x128xf32>
    %64 = arith.negf %62 : vector<8x128xf32>
    %65 = math.exp %64 : vector<8x128xf32>
    %cst_23 = arith.constant 1.000000e+00 : f32
    %66 = vector.broadcast %cst_23 : f32 to vector<8x128xf32>
    %67 = arith.addf %66, %65 : vector<8x128xf32>
    %68 = arith.divf %66, %67 : vector<8x128xf32>
    %69 = arith.select %15, %63, %68 : vector<8x128xi1>, vector<8x128xf32>
    %70 = vector.extract_strided_slice %69 {offsets = [0, 0], sizes = [8, 32], strides = [1, 1]} : vector<8x128xf32> to vector<8x32xf32>
    %71 = vector.extract_strided_slice %69 {offsets = [0, 32], sizes = [8, 32], strides = [1, 1]} : vector<8x128xf32> to vector<8x32xf32>
    %72 = vector.extract_strided_slice %69 {offsets = [0, 64], sizes = [8, 32], strides = [1, 1]} : vector<8x128xf32> to vector<8x32xf32>
    %73 = vector.extract_strided_slice %69 {offsets = [0, 96], sizes = [8, 32], strides = [1, 1]} : vector<8x128xf32> to vector<8x32xf32>
    %74 = arith.mulf %71, %36 : vector<8x32xf32>
    %75 = arith.mulf %70, %72 : vector<8x32xf32>
    %76 = arith.addf %74, %75 : vector<8x32xf32>
    %77 = math.tanh %76 : vector<8x32xf32>
    %78 = arith.mulf %73, %77 : vector<8x32xf32>
    %cst_24 = arith.constant dense<0.000000e+00> : vector<8x128xf32>
    %79 = tpu.matmul %78, %8, %cst_24 {dimension_numbers = #tpu.dot_dimension_numbers<[1], [0], [0], [1], [0, 0, 1, 1], [], []>} : vector<8x32xf32>, vector<32x128xf32>, vector<8x128xf32> -> vector<8x128xf32>
    %cst_25 = arith.constant dense<0.000000e+00> : vector<8x128xf32>
    %80 = tpu.matmul %59, %7, %cst_25 {dimension_numbers = #tpu.dot_dimension_numbers<[1], [0], [0], [1], [0, 0, 1, 1], [], []>} : vector<8x32xf32>, vector<32x128xf32>, vector<8x128xf32> -> vector<8x128xf32>
    %81 = arith.addf %79, %80 : vector<8x128xf32>
    %82 = vector.broadcast %9 : vector<1x128xf32> to vector<8x128xf32>
    %83 = arith.addf %81, %82 : vector<8x128xf32>
    %84 = math.tanh %83 : vector<8x128xf32>
    %85 = arith.negf %83 : vector<8x128xf32>
    %86 = math.exp %85 : vector<8x128xf32>
    %cst_26 = arith.constant 1.000000e+00 : f32
    %87 = vector.broadcast %cst_26 : f32 to vector<8x128xf32>
    %88 = arith.addf %87, %86 : vector<8x128xf32>
    %89 = arith.divf %87, %88 : vector<8x128xf32>
    %90 = arith.select %15, %84, %89 : vector<8x128xi1>, vector<8x128xf32>
    %91 = vector.extract_strided_slice %90 {offsets = [0, 0], sizes = [8, 32], strides = [1, 1]} : vector<8x128xf32> to vector<8x32xf32>
    %92 = vector.extract_strided_slice %90 {offsets = [0, 32], sizes = [8, 32], strides = [1, 1]} : vector<8x128xf32> to vector<8x32xf32>
    %93 = vector.extract_strided_slice %90 {offsets = [0, 64], sizes = [8, 32], strides = [1, 1]} : vector<8x128xf32> to vector<8x32xf32>
    %94 = vector.extract_strided_slice %90 {offsets = [0, 96], sizes = [8, 32], strides = [1, 1]} : vector<8x128xf32> to vector<8x32xf32>
    %95 = arith.mulf %92, %57 : vector<8x32xf32>
    %96 = arith.mulf %91, %93 : vector<8x32xf32>
    %97 = arith.addf %95, %96 : vector<8x32xf32>
    %98 = math.tanh %97 : vector<8x32xf32>
    %99 = arith.mulf %94, %98 : vector<8x32xf32>
    %100 = vector.extract_strided_slice %5 {offsets = [16, 0], sizes = [8, 128], strides = [1, 1]} : vector<64x128xf32> to vector<8x128xf32>
    %cst_27 = arith.constant dense<0.000000e+00> : vector<8x128xf32>
    %101 = tpu.matmul %78, %6, %cst_27 {dimension_numbers = #tpu.dot_dimension_numbers<[1], [0], [0], [1], [0, 0, 1, 1], [], []>} : vector<8x32xf32>, vector<32x128xf32>, vector<8x128xf32> -> vector<8x128xf32>
    %102 = arith.addf %100, %101 : vector<8x128xf32>
    %103 = math.tanh %102 : vector<8x128xf32>
    %104 = arith.negf %102 : vector<8x128xf32>
    %105 = math.exp %104 : vector<8x128xf32>
    %cst_28 = arith.constant 1.000000e+00 : f32
    %106 = vector.broadcast %cst_28 : f32 to vector<8x128xf32>
    %107 = arith.addf %106, %105 : vector<8x128xf32>
    %108 = arith.divf %106, %107 : vector<8x128xf32>
    %109 = arith.select %15, %103, %108 : vector<8x128xi1>, vector<8x128xf32>
    %110 = vector.extract_strided_slice %109 {offsets = [0, 0], sizes = [8, 32], strides = [1, 1]} : vector<8x128xf32> to vector<8x32xf32>
    %111 = vector.extract_strided_slice %109 {offsets = [0, 32], sizes = [8, 32], strides = [1, 1]} : vector<8x128xf32> to vector<8x32xf32>
    %112 = vector.extract_strided_slice %109 {offsets = [0, 64], sizes = [8, 32], strides = [1, 1]} : vector<8x128xf32> to vector<8x32xf32>
    %113 = vector.extract_strided_slice %109 {offsets = [0, 96], sizes = [8, 32], strides = [1, 1]} : vector<8x128xf32> to vector<8x32xf32>
    %114 = arith.mulf %111, %76 : vector<8x32xf32>
    %115 = arith.mulf %110, %112 : vector<8x32xf32>
    %116 = arith.addf %114, %115 : vector<8x32xf32>
    %117 = math.tanh %116 : vector<8x32xf32>
    %118 = arith.mulf %113, %117 : vector<8x32xf32>
    %cst_29 = arith.constant dense<0.000000e+00> : vector<8x128xf32>
    %119 = tpu.matmul %118, %8, %cst_29 {dimension_numbers = #tpu.dot_dimension_numbers<[1], [0], [0], [1], [0, 0, 1, 1], [], []>} : vector<8x32xf32>, vector<32x128xf32>, vector<8x128xf32> -> vector<8x128xf32>
    %cst_30 = arith.constant dense<0.000000e+00> : vector<8x128xf32>
    %120 = tpu.matmul %99, %7, %cst_30 {dimension_numbers = #tpu.dot_dimension_numbers<[1], [0], [0], [1], [0, 0, 1, 1], [], []>} : vector<8x32xf32>, vector<32x128xf32>, vector<8x128xf32> -> vector<8x128xf32>
    %121 = arith.addf %119, %120 : vector<8x128xf32>
    %122 = vector.broadcast %9 : vector<1x128xf32> to vector<8x128xf32>
    %123 = arith.addf %121, %122 : vector<8x128xf32>
    %124 = math.tanh %123 : vector<8x128xf32>
    %125 = arith.negf %123 : vector<8x128xf32>
    %126 = math.exp %125 : vector<8x128xf32>
    %cst_31 = arith.constant 1.000000e+00 : f32
    %127 = vector.broadcast %cst_31 : f32 to vector<8x128xf32>
    %128 = arith.addf %127, %126 : vector<8x128xf32>
    %129 = arith.divf %127, %128 : vector<8x128xf32>
    %130 = arith.select %15, %124, %129 : vector<8x128xi1>, vector<8x128xf32>
    %131 = vector.extract_strided_slice %130 {offsets = [0, 0], sizes = [8, 32], strides = [1, 1]} : vector<8x128xf32> to vector<8x32xf32>
    %132 = vector.extract_strided_slice %130 {offsets = [0, 32], sizes = [8, 32], strides = [1, 1]} : vector<8x128xf32> to vector<8x32xf32>
    %133 = vector.extract_strided_slice %130 {offsets = [0, 64], sizes = [8, 32], strides = [1, 1]} : vector<8x128xf32> to vector<8x32xf32>
    %134 = vector.extract_strided_slice %130 {offsets = [0, 96], sizes = [8, 32], strides = [1, 1]} : vector<8x128xf32> to vector<8x32xf32>
    %135 = arith.mulf %132, %97 : vector<8x32xf32>
    %136 = arith.mulf %131, %133 : vector<8x32xf32>
    %137 = arith.addf %135, %136 : vector<8x32xf32>
    %138 = math.tanh %137 : vector<8x32xf32>
    %139 = arith.mulf %134, %138 : vector<8x32xf32>
    %140 = vector.extract_strided_slice %5 {offsets = [24, 0], sizes = [8, 128], strides = [1, 1]} : vector<64x128xf32> to vector<8x128xf32>
    %cst_32 = arith.constant dense<0.000000e+00> : vector<8x128xf32>
    %141 = tpu.matmul %118, %6, %cst_32 {dimension_numbers = #tpu.dot_dimension_numbers<[1], [0], [0], [1], [0, 0, 1, 1], [], []>} : vector<8x32xf32>, vector<32x128xf32>, vector<8x128xf32> -> vector<8x128xf32>
    %142 = arith.addf %140, %141 : vector<8x128xf32>
    %143 = math.tanh %142 : vector<8x128xf32>
    %144 = arith.negf %142 : vector<8x128xf32>
    %145 = math.exp %144 : vector<8x128xf32>
    %cst_33 = arith.constant 1.000000e+00 : f32
    %146 = vector.broadcast %cst_33 : f32 to vector<8x128xf32>
    %147 = arith.addf %146, %145 : vector<8x128xf32>
    %148 = arith.divf %146, %147 : vector<8x128xf32>
    %149 = arith.select %15, %143, %148 : vector<8x128xi1>, vector<8x128xf32>
    %150 = vector.extract_strided_slice %149 {offsets = [0, 0], sizes = [8, 32], strides = [1, 1]} : vector<8x128xf32> to vector<8x32xf32>
    %151 = vector.extract_strided_slice %149 {offsets = [0, 32], sizes = [8, 32], strides = [1, 1]} : vector<8x128xf32> to vector<8x32xf32>
    %152 = vector.extract_strided_slice %149 {offsets = [0, 64], sizes = [8, 32], strides = [1, 1]} : vector<8x128xf32> to vector<8x32xf32>
    %153 = vector.extract_strided_slice %149 {offsets = [0, 96], sizes = [8, 32], strides = [1, 1]} : vector<8x128xf32> to vector<8x32xf32>
    %154 = arith.mulf %151, %116 : vector<8x32xf32>
    %155 = arith.mulf %150, %152 : vector<8x32xf32>
    %156 = arith.addf %154, %155 : vector<8x32xf32>
    %157 = math.tanh %156 : vector<8x32xf32>
    %158 = arith.mulf %153, %157 : vector<8x32xf32>
    %cst_34 = arith.constant dense<0.000000e+00> : vector<8x128xf32>
    %159 = tpu.matmul %158, %8, %cst_34 {dimension_numbers = #tpu.dot_dimension_numbers<[1], [0], [0], [1], [0, 0, 1, 1], [], []>} : vector<8x32xf32>, vector<32x128xf32>, vector<8x128xf32> -> vector<8x128xf32>
    %cst_35 = arith.constant dense<0.000000e+00> : vector<8x128xf32>
    %160 = tpu.matmul %139, %7, %cst_35 {dimension_numbers = #tpu.dot_dimension_numbers<[1], [0], [0], [1], [0, 0, 1, 1], [], []>} : vector<8x32xf32>, vector<32x128xf32>, vector<8x128xf32> -> vector<8x128xf32>
    %161 = arith.addf %159, %160 : vector<8x128xf32>
    %162 = vector.broadcast %9 : vector<1x128xf32> to vector<8x128xf32>
    %163 = arith.addf %161, %162 : vector<8x128xf32>
    %164 = math.tanh %163 : vector<8x128xf32>
    %165 = arith.negf %163 : vector<8x128xf32>
    %166 = math.exp %165 : vector<8x128xf32>
    %cst_36 = arith.constant 1.000000e+00 : f32
    %167 = vector.broadcast %cst_36 : f32 to vector<8x128xf32>
    %168 = arith.addf %167, %166 : vector<8x128xf32>
    %169 = arith.divf %167, %168 : vector<8x128xf32>
    %170 = arith.select %15, %164, %169 : vector<8x128xi1>, vector<8x128xf32>
    %171 = vector.extract_strided_slice %170 {offsets = [0, 0], sizes = [8, 32], strides = [1, 1]} : vector<8x128xf32> to vector<8x32xf32>
    %172 = vector.extract_strided_slice %170 {offsets = [0, 32], sizes = [8, 32], strides = [1, 1]} : vector<8x128xf32> to vector<8x32xf32>
    %173 = vector.extract_strided_slice %170 {offsets = [0, 64], sizes = [8, 32], strides = [1, 1]} : vector<8x128xf32> to vector<8x32xf32>
    %174 = vector.extract_strided_slice %170 {offsets = [0, 96], sizes = [8, 32], strides = [1, 1]} : vector<8x128xf32> to vector<8x32xf32>
    %175 = arith.mulf %172, %137 : vector<8x32xf32>
    %176 = arith.mulf %171, %173 : vector<8x32xf32>
    %177 = arith.addf %175, %176 : vector<8x32xf32>
    %178 = math.tanh %177 : vector<8x32xf32>
    %179 = arith.mulf %174, %178 : vector<8x32xf32>
    %180 = vector.extract_strided_slice %5 {offsets = [32, 0], sizes = [8, 128], strides = [1, 1]} : vector<64x128xf32> to vector<8x128xf32>
    %cst_37 = arith.constant dense<0.000000e+00> : vector<8x128xf32>
    %181 = tpu.matmul %158, %6, %cst_37 {dimension_numbers = #tpu.dot_dimension_numbers<[1], [0], [0], [1], [0, 0, 1, 1], [], []>} : vector<8x32xf32>, vector<32x128xf32>, vector<8x128xf32> -> vector<8x128xf32>
    %182 = arith.addf %180, %181 : vector<8x128xf32>
    %183 = math.tanh %182 : vector<8x128xf32>
    %184 = arith.negf %182 : vector<8x128xf32>
    %185 = math.exp %184 : vector<8x128xf32>
    %cst_38 = arith.constant 1.000000e+00 : f32
    %186 = vector.broadcast %cst_38 : f32 to vector<8x128xf32>
    %187 = arith.addf %186, %185 : vector<8x128xf32>
    %188 = arith.divf %186, %187 : vector<8x128xf32>
    %189 = arith.select %15, %183, %188 : vector<8x128xi1>, vector<8x128xf32>
    %190 = vector.extract_strided_slice %189 {offsets = [0, 0], sizes = [8, 32], strides = [1, 1]} : vector<8x128xf32> to vector<8x32xf32>
    %191 = vector.extract_strided_slice %189 {offsets = [0, 32], sizes = [8, 32], strides = [1, 1]} : vector<8x128xf32> to vector<8x32xf32>
    %192 = vector.extract_strided_slice %189 {offsets = [0, 64], sizes = [8, 32], strides = [1, 1]} : vector<8x128xf32> to vector<8x32xf32>
    %193 = vector.extract_strided_slice %189 {offsets = [0, 96], sizes = [8, 32], strides = [1, 1]} : vector<8x128xf32> to vector<8x32xf32>
    %194 = arith.mulf %191, %156 : vector<8x32xf32>
    %195 = arith.mulf %190, %192 : vector<8x32xf32>
    %196 = arith.addf %194, %195 : vector<8x32xf32>
    %197 = math.tanh %196 : vector<8x32xf32>
    %198 = arith.mulf %193, %197 : vector<8x32xf32>
    %cst_39 = arith.constant dense<0.000000e+00> : vector<8x128xf32>
    %199 = tpu.matmul %198, %8, %cst_39 {dimension_numbers = #tpu.dot_dimension_numbers<[1], [0], [0], [1], [0, 0, 1, 1], [], []>} : vector<8x32xf32>, vector<32x128xf32>, vector<8x128xf32> -> vector<8x128xf32>
    %cst_40 = arith.constant dense<0.000000e+00> : vector<8x128xf32>
    %200 = tpu.matmul %179, %7, %cst_40 {dimension_numbers = #tpu.dot_dimension_numbers<[1], [0], [0], [1], [0, 0, 1, 1], [], []>} : vector<8x32xf32>, vector<32x128xf32>, vector<8x128xf32> -> vector<8x128xf32>
    %201 = arith.addf %199, %200 : vector<8x128xf32>
    %202 = vector.broadcast %9 : vector<1x128xf32> to vector<8x128xf32>
    %203 = arith.addf %201, %202 : vector<8x128xf32>
    %204 = math.tanh %203 : vector<8x128xf32>
    %205 = arith.negf %203 : vector<8x128xf32>
    %206 = math.exp %205 : vector<8x128xf32>
    %cst_41 = arith.constant 1.000000e+00 : f32
    %207 = vector.broadcast %cst_41 : f32 to vector<8x128xf32>
    %208 = arith.addf %207, %206 : vector<8x128xf32>
    %209 = arith.divf %207, %208 : vector<8x128xf32>
    %210 = arith.select %15, %204, %209 : vector<8x128xi1>, vector<8x128xf32>
    %211 = vector.extract_strided_slice %210 {offsets = [0, 0], sizes = [8, 32], strides = [1, 1]} : vector<8x128xf32> to vector<8x32xf32>
    %212 = vector.extract_strided_slice %210 {offsets = [0, 32], sizes = [8, 32], strides = [1, 1]} : vector<8x128xf32> to vector<8x32xf32>
    %213 = vector.extract_strided_slice %210 {offsets = [0, 64], sizes = [8, 32], strides = [1, 1]} : vector<8x128xf32> to vector<8x32xf32>
    %214 = vector.extract_strided_slice %210 {offsets = [0, 96], sizes = [8, 32], strides = [1, 1]} : vector<8x128xf32> to vector<8x32xf32>
    %215 = arith.mulf %212, %177 : vector<8x32xf32>
    %216 = arith.mulf %211, %213 : vector<8x32xf32>
    %217 = arith.addf %215, %216 : vector<8x32xf32>
    %218 = math.tanh %217 : vector<8x32xf32>
    %219 = arith.mulf %214, %218 : vector<8x32xf32>
    %220 = vector.extract_strided_slice %5 {offsets = [40, 0], sizes = [8, 128], strides = [1, 1]} : vector<64x128xf32> to vector<8x128xf32>
    %cst_42 = arith.constant dense<0.000000e+00> : vector<8x128xf32>
    %221 = tpu.matmul %198, %6, %cst_42 {dimension_numbers = #tpu.dot_dimension_numbers<[1], [0], [0], [1], [0, 0, 1, 1], [], []>} : vector<8x32xf32>, vector<32x128xf32>, vector<8x128xf32> -> vector<8x128xf32>
    %222 = arith.addf %220, %221 : vector<8x128xf32>
    %223 = math.tanh %222 : vector<8x128xf32>
    %224 = arith.negf %222 : vector<8x128xf32>
    %225 = math.exp %224 : vector<8x128xf32>
    %cst_43 = arith.constant 1.000000e+00 : f32
    %226 = vector.broadcast %cst_43 : f32 to vector<8x128xf32>
    %227 = arith.addf %226, %225 : vector<8x128xf32>
    %228 = arith.divf %226, %227 : vector<8x128xf32>
    %229 = arith.select %15, %223, %228 : vector<8x128xi1>, vector<8x128xf32>
    %230 = vector.extract_strided_slice %229 {offsets = [0, 0], sizes = [8, 32], strides = [1, 1]} : vector<8x128xf32> to vector<8x32xf32>
    %231 = vector.extract_strided_slice %229 {offsets = [0, 32], sizes = [8, 32], strides = [1, 1]} : vector<8x128xf32> to vector<8x32xf32>
    %232 = vector.extract_strided_slice %229 {offsets = [0, 64], sizes = [8, 32], strides = [1, 1]} : vector<8x128xf32> to vector<8x32xf32>
    %233 = vector.extract_strided_slice %229 {offsets = [0, 96], sizes = [8, 32], strides = [1, 1]} : vector<8x128xf32> to vector<8x32xf32>
    %234 = arith.mulf %231, %196 : vector<8x32xf32>
    %235 = arith.mulf %230, %232 : vector<8x32xf32>
    %236 = arith.addf %234, %235 : vector<8x32xf32>
    %237 = math.tanh %236 : vector<8x32xf32>
    %238 = arith.mulf %233, %237 : vector<8x32xf32>
    %cst_44 = arith.constant dense<0.000000e+00> : vector<8x128xf32>
    %239 = tpu.matmul %238, %8, %cst_44 {dimension_numbers = #tpu.dot_dimension_numbers<[1], [0], [0], [1], [0, 0, 1, 1], [], []>} : vector<8x32xf32>, vector<32x128xf32>, vector<8x128xf32> -> vector<8x128xf32>
    %cst_45 = arith.constant dense<0.000000e+00> : vector<8x128xf32>
    %240 = tpu.matmul %219, %7, %cst_45 {dimension_numbers = #tpu.dot_dimension_numbers<[1], [0], [0], [1], [0, 0, 1, 1], [], []>} : vector<8x32xf32>, vector<32x128xf32>, vector<8x128xf32> -> vector<8x128xf32>
    %241 = arith.addf %239, %240 : vector<8x128xf32>
    %242 = vector.broadcast %9 : vector<1x128xf32> to vector<8x128xf32>
    %243 = arith.addf %241, %242 : vector<8x128xf32>
    %244 = math.tanh %243 : vector<8x128xf32>
    %245 = arith.negf %243 : vector<8x128xf32>
    %246 = math.exp %245 : vector<8x128xf32>
    %cst_46 = arith.constant 1.000000e+00 : f32
    %247 = vector.broadcast %cst_46 : f32 to vector<8x128xf32>
    %248 = arith.addf %247, %246 : vector<8x128xf32>
    %249 = arith.divf %247, %248 : vector<8x128xf32>
    %250 = arith.select %15, %244, %249 : vector<8x128xi1>, vector<8x128xf32>
    %251 = vector.extract_strided_slice %250 {offsets = [0, 0], sizes = [8, 32], strides = [1, 1]} : vector<8x128xf32> to vector<8x32xf32>
    %252 = vector.extract_strided_slice %250 {offsets = [0, 32], sizes = [8, 32], strides = [1, 1]} : vector<8x128xf32> to vector<8x32xf32>
    %253 = vector.extract_strided_slice %250 {offsets = [0, 64], sizes = [8, 32], strides = [1, 1]} : vector<8x128xf32> to vector<8x32xf32>
    %254 = vector.extract_strided_slice %250 {offsets = [0, 96], sizes = [8, 32], strides = [1, 1]} : vector<8x128xf32> to vector<8x32xf32>
    %255 = arith.mulf %252, %217 : vector<8x32xf32>
    %256 = arith.mulf %251, %253 : vector<8x32xf32>
    %257 = arith.addf %255, %256 : vector<8x32xf32>
    %258 = math.tanh %257 : vector<8x32xf32>
    %259 = arith.mulf %254, %258 : vector<8x32xf32>
    %260 = vector.extract_strided_slice %5 {offsets = [48, 0], sizes = [8, 128], strides = [1, 1]} : vector<64x128xf32> to vector<8x128xf32>
    %cst_47 = arith.constant dense<0.000000e+00> : vector<8x128xf32>
    %261 = tpu.matmul %238, %6, %cst_47 {dimension_numbers = #tpu.dot_dimension_numbers<[1], [0], [0], [1], [0, 0, 1, 1], [], []>} : vector<8x32xf32>, vector<32x128xf32>, vector<8x128xf32> -> vector<8x128xf32>
    %262 = arith.addf %260, %261 : vector<8x128xf32>
    %263 = math.tanh %262 : vector<8x128xf32>
    %264 = arith.negf %262 : vector<8x128xf32>
    %265 = math.exp %264 : vector<8x128xf32>
    %cst_48 = arith.constant 1.000000e+00 : f32
    %266 = vector.broadcast %cst_48 : f32 to vector<8x128xf32>
    %267 = arith.addf %266, %265 : vector<8x128xf32>
    %268 = arith.divf %266, %267 : vector<8x128xf32>
    %269 = arith.select %15, %263, %268 : vector<8x128xi1>, vector<8x128xf32>
    %270 = vector.extract_strided_slice %269 {offsets = [0, 0], sizes = [8, 32], strides = [1, 1]} : vector<8x128xf32> to vector<8x32xf32>
    %271 = vector.extract_strided_slice %269 {offsets = [0, 32], sizes = [8, 32], strides = [1, 1]} : vector<8x128xf32> to vector<8x32xf32>
    %272 = vector.extract_strided_slice %269 {offsets = [0, 64], sizes = [8, 32], strides = [1, 1]} : vector<8x128xf32> to vector<8x32xf32>
    %273 = vector.extract_strided_slice %269 {offsets = [0, 96], sizes = [8, 32], strides = [1, 1]} : vector<8x128xf32> to vector<8x32xf32>
    %274 = arith.mulf %271, %236 : vector<8x32xf32>
    %275 = arith.mulf %270, %272 : vector<8x32xf32>
    %276 = arith.addf %274, %275 : vector<8x32xf32>
    %277 = math.tanh %276 : vector<8x32xf32>
    %278 = arith.mulf %273, %277 : vector<8x32xf32>
    %cst_49 = arith.constant dense<0.000000e+00> : vector<8x128xf32>
    %279 = tpu.matmul %278, %8, %cst_49 {dimension_numbers = #tpu.dot_dimension_numbers<[1], [0], [0], [1], [0, 0, 1, 1], [], []>} : vector<8x32xf32>, vector<32x128xf32>, vector<8x128xf32> -> vector<8x128xf32>
    %cst_50 = arith.constant dense<0.000000e+00> : vector<8x128xf32>
    %280 = tpu.matmul %259, %7, %cst_50 {dimension_numbers = #tpu.dot_dimension_numbers<[1], [0], [0], [1], [0, 0, 1, 1], [], []>} : vector<8x32xf32>, vector<32x128xf32>, vector<8x128xf32> -> vector<8x128xf32>
    %281 = arith.addf %279, %280 : vector<8x128xf32>
    %282 = vector.broadcast %9 : vector<1x128xf32> to vector<8x128xf32>
    %283 = arith.addf %281, %282 : vector<8x128xf32>
    %284 = math.tanh %283 : vector<8x128xf32>
    %285 = arith.negf %283 : vector<8x128xf32>
    %286 = math.exp %285 : vector<8x128xf32>
    %cst_51 = arith.constant 1.000000e+00 : f32
    %287 = vector.broadcast %cst_51 : f32 to vector<8x128xf32>
    %288 = arith.addf %287, %286 : vector<8x128xf32>
    %289 = arith.divf %287, %288 : vector<8x128xf32>
    %290 = arith.select %15, %284, %289 : vector<8x128xi1>, vector<8x128xf32>
    %291 = vector.extract_strided_slice %290 {offsets = [0, 0], sizes = [8, 32], strides = [1, 1]} : vector<8x128xf32> to vector<8x32xf32>
    %292 = vector.extract_strided_slice %290 {offsets = [0, 32], sizes = [8, 32], strides = [1, 1]} : vector<8x128xf32> to vector<8x32xf32>
    %293 = vector.extract_strided_slice %290 {offsets = [0, 64], sizes = [8, 32], strides = [1, 1]} : vector<8x128xf32> to vector<8x32xf32>
    %294 = vector.extract_strided_slice %290 {offsets = [0, 96], sizes = [8, 32], strides = [1, 1]} : vector<8x128xf32> to vector<8x32xf32>
    %295 = arith.mulf %292, %257 : vector<8x32xf32>
    %296 = arith.mulf %291, %293 : vector<8x32xf32>
    %297 = arith.addf %295, %296 : vector<8x32xf32>
    %298 = math.tanh %297 : vector<8x32xf32>
    %299 = arith.mulf %294, %298 : vector<8x32xf32>
    %300 = vector.extract_strided_slice %5 {offsets = [56, 0], sizes = [8, 128], strides = [1, 1]} : vector<64x128xf32> to vector<8x128xf32>
    %cst_52 = arith.constant dense<0.000000e+00> : vector<8x128xf32>
    %301 = tpu.matmul %278, %6, %cst_52 {dimension_numbers = #tpu.dot_dimension_numbers<[1], [0], [0], [1], [0, 0, 1, 1], [], []>} : vector<8x32xf32>, vector<32x128xf32>, vector<8x128xf32> -> vector<8x128xf32>
    %302 = arith.addf %300, %301 : vector<8x128xf32>
    %303 = math.tanh %302 : vector<8x128xf32>
    %304 = arith.negf %302 : vector<8x128xf32>
    %305 = math.exp %304 : vector<8x128xf32>
    %cst_53 = arith.constant 1.000000e+00 : f32
    %306 = vector.broadcast %cst_53 : f32 to vector<8x128xf32>
    %307 = arith.addf %306, %305 : vector<8x128xf32>
    %308 = arith.divf %306, %307 : vector<8x128xf32>
    %309 = arith.select %15, %303, %308 : vector<8x128xi1>, vector<8x128xf32>
    %310 = vector.extract_strided_slice %309 {offsets = [0, 0], sizes = [8, 32], strides = [1, 1]} : vector<8x128xf32> to vector<8x32xf32>
    %311 = vector.extract_strided_slice %309 {offsets = [0, 32], sizes = [8, 32], strides = [1, 1]} : vector<8x128xf32> to vector<8x32xf32>
    %312 = vector.extract_strided_slice %309 {offsets = [0, 64], sizes = [8, 32], strides = [1, 1]} : vector<8x128xf32> to vector<8x32xf32>
    %313 = vector.extract_strided_slice %309 {offsets = [0, 96], sizes = [8, 32], strides = [1, 1]} : vector<8x128xf32> to vector<8x32xf32>
    %314 = arith.mulf %311, %276 : vector<8x32xf32>
    %315 = arith.mulf %310, %312 : vector<8x32xf32>
    %316 = arith.addf %314, %315 : vector<8x32xf32>
    %317 = math.tanh %316 : vector<8x32xf32>
    %318 = arith.mulf %313, %317 : vector<8x32xf32>
    %cst_54 = arith.constant dense<0.000000e+00> : vector<8x128xf32>
    %319 = tpu.matmul %318, %8, %cst_54 {dimension_numbers = #tpu.dot_dimension_numbers<[1], [0], [0], [1], [0, 0, 1, 1], [], []>} : vector<8x32xf32>, vector<32x128xf32>, vector<8x128xf32> -> vector<8x128xf32>
    %cst_55 = arith.constant dense<0.000000e+00> : vector<8x128xf32>
    %320 = tpu.matmul %299, %7, %cst_55 {dimension_numbers = #tpu.dot_dimension_numbers<[1], [0], [0], [1], [0, 0, 1, 1], [], []>} : vector<8x32xf32>, vector<32x128xf32>, vector<8x128xf32> -> vector<8x128xf32>
    %321 = arith.addf %319, %320 : vector<8x128xf32>
    %322 = vector.broadcast %9 : vector<1x128xf32> to vector<8x128xf32>
    %323 = arith.addf %321, %322 : vector<8x128xf32>
    %324 = math.tanh %323 : vector<8x128xf32>
    %325 = arith.negf %323 : vector<8x128xf32>
    %326 = math.exp %325 : vector<8x128xf32>
    %cst_56 = arith.constant 1.000000e+00 : f32
    %327 = vector.broadcast %cst_56 : f32 to vector<8x128xf32>
    %328 = arith.addf %327, %326 : vector<8x128xf32>
    %329 = arith.divf %327, %328 : vector<8x128xf32>
    %330 = arith.select %15, %324, %329 : vector<8x128xi1>, vector<8x128xf32>
    %331 = vector.extract_strided_slice %330 {offsets = [0, 0], sizes = [8, 32], strides = [1, 1]} : vector<8x128xf32> to vector<8x32xf32>
    %332 = vector.extract_strided_slice %330 {offsets = [0, 32], sizes = [8, 32], strides = [1, 1]} : vector<8x128xf32> to vector<8x32xf32>
    %333 = vector.extract_strided_slice %330 {offsets = [0, 64], sizes = [8, 32], strides = [1, 1]} : vector<8x128xf32> to vector<8x32xf32>
    %334 = vector.extract_strided_slice %330 {offsets = [0, 96], sizes = [8, 32], strides = [1, 1]} : vector<8x128xf32> to vector<8x32xf32>
    %335 = arith.mulf %332, %297 : vector<8x32xf32>
    %336 = arith.mulf %331, %333 : vector<8x32xf32>
    %337 = arith.addf %335, %336 : vector<8x32xf32>
    %338 = math.tanh %337 : vector<8x32xf32>
    %339 = arith.mulf %334, %338 : vector<8x32xf32>
    %c0_57 = arith.constant 0 : index
    %c0_58 = arith.constant 0 : index
    %340 = vector.load %arg7[%c0_57, %c0_58] : memref<32x128xf32, #tpu.memory_space<vmem>>, vector<32x128xf32>
    %cst_59 = arith.constant dense<0.000000e+00> : vector<8x128xf32>
    %341 = tpu.matmul %339, %340, %cst_59 {dimension_numbers = #tpu.dot_dimension_numbers<[1], [0], [0], [1], [0, 0, 1, 1], [], []>} : vector<8x32xf32>, vector<32x128xf32>, vector<8x128xf32> -> vector<8x128xf32>
    %c0_60 = arith.constant 0 : index
    %c0_61 = arith.constant 0 : index
    %342 = vector.load %arg8[%c0_60, %c0_61] : memref<1x128xf32, #tpu.memory_space<vmem>>, vector<1x128xf32>
    %343 = vector.broadcast %342 : vector<1x128xf32> to vector<8x128xf32>
    %344 = arith.addf %341, %343 : vector<8x128xf32>
    %c0_62 = arith.constant 0 : index
    %c0_63 = arith.constant 0 : index
    %345 = vector.load %arg9[%c0_62, %c0_63] : memref<8x128xf32, #tpu.memory_space<vmem>>, vector<8x128xf32>
    tpu.vector_store %arg9[%c0_62, %c0_63], %344 {strides = array<i32>} : memref<8x128xf32, #tpu.memory_space<vmem>>, vector<8x128xf32>,
    return
  }
}

</mosaic_0001>

<bundles_post_ra>
// kernel: lstm_model_pallas.1
= control target key start
LH: loop header
LB: loop body
LE: loop exit
PB: predicated region body
PF: predicated region fallthrough
CT: control target
= control target key end

     0   :  { %vm49_vm0 = vcmask 130048   ;;  %v3233_v0 = vmov 0.0|0.0   ;;  %vm3234_vm1 = vmmov 0   ;;  %v3235_v4 = vmov 0.0   ;;  %s3236_s25 = smov 64   ;;  %s3237_s26 = smov 32   ;;  %s3766_s1 = inlined_call_operand.vmem [shape: f32[16,128], index: 1, kind: input, shape index: {}]   ;;  %s3767_s2 = inlined_call_operand.vmem [shape: f32[32,128], index: 2, kind: input, shape index: {}]   ;;  %s3768_s0 = inlined_call_operand.vmem [shape: f32[64,16], index: 0, kind: input, shape index: {}]   ;;  %s3769_s3 = inlined_call_operand.vmem [shape: f32[1,128], index: 3, kind: input, shape index: {}]   ;;  %s3770_s4 = inlined_call_operand.vmem [shape: f32[32,128], index: 4, kind: input, shape index: {}]   ;;  %s3771_s5 = inlined_call_operand.vmem [shape: f32[32,128], index: 5, kind: input, shape index: {}]   ;;  %s3772_s6 = inlined_call_operand.vmem [shape: f32[1,128], index: 6, kind: input, shape index: {}]   ;;  %s3773_s7 = inlined_call_operand.vmem [shape: f32[32,128], index: 7, kind: input, shape index: {}]   ;;  %s3774_s8 = inlined_call_operand.vmem [shape: f32[1,128], index: 8, kind: input, shape index: {}]   ;;  %s3775_s9 = inlined_call_operand.vmem [shape: f32[8,128], index: 9, kind: output, shape index: {}]  }
   0x1   :  { %2949 = vmatprep.subr.bf16.mxu1 %v3233_v0  ;;  %v40_v1 = vld [vmem:[%s3766_s1] sm:$0xff]  ;;  %v41_v2 = vld [vmem:[%s3766_s1 + $0x8] sm:$0xff]  ;;  %2678 = vmatprep.mubr.msk.f32.mxu1 %vm3234_vm1, %v3235_v4  ;;  %v181_v9 = vld [vmem:[%s3767_s2 + $0x10] sm:$0xff]  ;;  %v192_v22 = vlaneseq  ;;  %vm197_vm5 = vcmask 261120  }
   0x2   :  { %v179_v3 = vld [vmem:[%s3767_s2] sm:$0xff]  ;;  %v2945_v5 = vpack.c.bf16 %v41_v2, %v40_v1  ;;  %v180_v6 = vld [vmem:[%s3767_s2 + $0x8] sm:$0xff]  ;;  %v182_v10 = vld [vmem:[%s3767_s2 + $0x18] sm:$0xff] }
   0x3   :  { %v32_v7 = vld [vmem:[%s3768_s0] sm:$0xff]  ;;  %v3306_v8 = vpack.c.bf16 %v180_v6, %v179_v3  ;;  %v33_v11 = vld [vmem:[%s3768_s0 + $0x8] sm:$0xff]  ;;  %v3319_v12 = vpack.c.bf16 %v182_v10, %v181_v9  ;;  %v193_v24 = vand.u32 127, %v192_v22  ;;  %v34_v34 = vld [vmem:[%s3768_s0 + $0x10] sm:$0xff] }
   0x4   :  { %2658 = vmatprep.mubr.msk.f32.mxu0 %vm49_vm0, %v32_v7  ;;  %2946 = vmatprep.subr.bf16.mxu0 %v2945_v5  ;;  %v3332_v13 = vld [vmem:[%s3769_s3] ss:$0 sm:$0xff]  ;;  %v35_v35 = vld [vmem:[%s3768_s0 + $0x18] sm:$0xff]  ;;  %v188_v38 = vld [vmem:[%s3770_s4 + $0x8] sm:$0xff] }
   0x5   :  { %2951 = vmatpush3.bf16.msra.mxu1 %v3306_v8  ;;  %2948 = vmatpush3.bf16.msra.mxu0 %v2945_v5  ;;  %vm194_vm2 = vcmp.ge.s32.totalorder %v193_v24, 64  ;;  %vm195_vm3 = vcmp.lt.s32.totalorder %v193_v24, 96  ;;  %v36_v36 = vld [vmem:[%s3768_s0 + $0x20] sm:$0xff]  ;;  %v184_v41 = vld [vmem:[%s3771_s5 + $0x8] sm:$0xff]  ;;  %v185_v42 = vld [vmem:[%s3771_s5 + $0x10] sm:$0xff] }
   0x6   :  { %2952 = vmatprep.subr.bf16.mxu1 %v3233_v0  ;;  %2961 = vmatprep.subr.bf16.mxu0 %v3233_v0  ;;  %vm3337_vm4 = vmand %vm194_vm2, %vm195_vm3  ;;  %v187_v37 = vld [vmem:[%s3770_s4] sm:$0xff]  ;;  %v186_v43 = vld [vmem:[%s3771_s5 + $0x18] sm:$0xff] }
   0x7   :  { %v183_v39 = vld [vmem:[%s3771_s5] sm:$0xff]  ;;  %v3367_v40 = vpack.c.bf16 %v188_v38, %v187_v37  ;;  %v37_v45 = vld [vmem:[%s3768_s0 + $0x28] sm:$0xff]  ;;  %v189_v46 = vld [vmem:[%s3770_s4 + $0x10] sm:$0xff]  ;;  %v3398_v50 = vpack.c.bf16 %v186_v43, %v185_v42 }
   0x8   :  { %2659 = vmatmul.mubr.msk.f32.vlgmr.msra.gmra.mrb[0].mxu0 %vm49_vm0, %v33_v11  ;;  %v3379_v44 = vpack.c.bf16 %v184_v41, %v183_v39  ;;  %v190_v47 = vld [vmem:[%s3770_s4 + $0x18] sm:$0xff]  ;;  %v38_v49 = vld [vmem:[%s3768_s0 + $0x30] sm:$0xff]  ;;  %v3454_v2 = vld [vmem:[%s3772_s6] ss:$0 sm:$0xff] }
   0x9   :  { %2954 = vmatpush3.bf16.msra.mxu1 %v3319_v12  ;;  %2661 = vmatprep.mubr.msk.f32.mxu0 %vm49_vm0, %v34_v34  ;;  %v3392_v48 = vpack.c.bf16 %v190_v47, %v189_v46  ;;  %v39_v51 = vld [vmem:[%s3768_s0 + $0x38] sm:$0xff]  ;;  %v2380_v25 = vld [vmem:[%s3773_s7 + $0x10] sm:$0xff] }
   0xa   :  { %2955 = vmatprep.subr.bf16.mxu1 %v3233_v0  ;;  %2963 = vmatpush3.bf16.msra.mxu0 %v3367_v40 }
   0xb   :  { %2964 = vmatprep.subr.bf16.mxu0 %v3233_v0 }
   0xc   :  { %2679 = vmatmul.mubr.f32.vlgmr.msra.gmra.mrb[0].mxu1 %v3235_v4  ;;  %2662 = vmatmul.mubr.msk.f32.gmra.mrb[2].mxu0 %vm49_vm0, %v35_v35 }
   0xd   :  { %2689 = vmatprep.mubr.msk.f32.mxu1 %vm3234_vm1, %v3235_v4  ;;  %2664 = vmatprep.mubr.msk.f32.mxu0 %vm49_vm0, %v36_v36 }
   0xe   :  { %2957 = vmatpush3.bf16.msra.mxu1 %v3379_v44  ;;  %2966 = vmatpush3.bf16.msra.mxu0 %v3392_v48 }
   0xf   :  { %2958 = vmatprep.subr.bf16.mxu1 %v3233_v0  ;;  %2973 = vmatprep.subr.bf16.mxu0 %v3233_v0 }
  0x10   :  { %2665 = vmatmul.mubr.msk.f32.gmra.mrb[4].mxu0 %vm49_vm0, %v37_v45 }
  0x11   :  { %2667 = vmatprep.mubr.msk.f32.mxu0 %vm49_vm0, %v38_v49 }
  0x12   :  { %2960 = vmatpush3.bf16.msra.mxu1 %v3398_v50 }
  0x13   :  { %2967 = vmatprep.subr.bf16.mxu1 %v3233_v0 }
  0x14   :  { %2668 = vmatmul.mubr.msk.f32.gmra.mrb[6].mxu0 %vm49_vm0, %v39_v51 }
  0x15   :  { %2700 = vmatprep.mubr.msk.f32.mxu0 %vm3234_vm1, %v3235_v4  ;;  %2690 = vmatmul.mubr.f32.vlgmr.msra.gmra.mrb[2].mxu1 %v3235_v4 }
  0x16   :  { %2969 = vmatpush3.bf16.msra.mxu1 %v3306_v8  ;;  %2711 = vmatprep.mubr.msk.f32.mxu1 %vm3234_vm1, %v3235_v4 }
  0x17   :  { %2970 = vmatprep.subr.bf16.mxu1 %v3233_v0 }
  0x1a   :  { %2972 = vmatpush3.bf16.msra.mxu1 %v3319_v12 }
  0x1b   :  { %2979 = vmatprep.subr.bf16.mxu1 %v3233_v0 }
  0xdb   :  { %v3334_v14 = vpop.f32.mrb[0].mxu0 }
  0xdc   :  { %v140_v15 = vpop.f32.mrb[1].mxu0  ;;  %v146_v1 = vadd.f32 %v3334_v14, %v3332_v13 }
  0xdd   :  { %v141_v16 = vadd.f32 %v3332_v13, %v140_v15 }
  0xdf   :  { %v267_v17 = vpop.f32.mrb[0].mxu1  ;;  %v3423_v55 = vpop.f32.mrb[2].mxu0 }
  0xe0   :  { %v271_v18 = vadd.f32 %v267_v17, %v141_v16  ;;  %v2680_v19 = vpop.f32.mrb[1].mxu1  ;;  %v3425_v56 = vpop.f32.mrb[3].mxu0 }
  0xe2   :  { %v2478_v20 = vmul.f32 -1.442695, %v271_v18 }
  0xe3   :  { %v3427_v57 = vpop.f32.mrb[4].mxu0 }
  0xe4   :  { %3104 = vpow2.f32 %v2478_v20  ;;  %v3429_v58 = vpop.f32.mrb[5].mxu0 }
  0xe5   :  { %3106 = vtanh.f32 %v271_v18 }
  0xe7   :  { %v3431_v59 = vpop.f32.mrb[6].mxu0 }
  0xe8   :  { %v3433_v60 = vpop.f32.mrb[7].mxu0  ;;  %v363_v61 = vpop.f32.mrb[2].mxu1 }
  0xe9   :  { %v2691_v62 = vpop.f32.mrb[3].mxu1 }
  0xea   :  { %v151_v62 = vadd.f32 %v3332_v13, %v3425_v56 }
  0xee   :  { %v3105_v21 = vpop.eup %3104 }
  0xef   :  { %v276_v23 = vadd.f32 1.0, %v3105_v21  ;;  %v3107_v26 = vpop.eup %3106 }
  0xf1   :  { %3108 = vrcp.f32 %v276_v23 }
  0xfb   :  { %v3109_v27 = vpop.eup %3108 }
  0xfc   :  { %v279_v28 = vsel %vm3337_vm4, %v3107_v26, %v3109_v27 }
  0xfd   :  { %282 = vrot.lane.b32.xlu0 %v279_v28, %s3236_s25  ;;  %v280_v31 = vmul.f32 0.0, %v279_v28 }
 0x16f   :  { %v283_v29 = vpop.permute.xlu0 %282 }
 0x170   :  { %v285_v30 = vmul.f32 %v283_v29, %v279_v28 }
 0x172   :  { %287 = vrot.lane.b32.xlu0 %v285_v30, %s3237_s26 }
 0x1e4   :  { %v288_v32 = vpop.permute.xlu0 %287 }
 0x1e5   :  { %v3345_v33 = vadd.f32 %v288_v32, %v280_v31 }
 0x1e7   :  { %3110 = vtanh.f32 %v3345_v33 }
 0x1f1   :  { %v3111_v52 = vpop.eup %3110 }
 0x1f2   :  { %293 = vrot.lane.b32.xlu1 %v3111_v52, %s3236_s25 }
 0x264   :  { %v294_v53 = vpop.permute.xlu1 %293 }
 0x265   :  { %v296_v54 = vmul.f32 %v294_v53, %v279_v28 }
 0x267   :  { %368 = vrot.lane.b32.xlu1 %v296_v54, %s3237_s26 }
 0x2d9   :  { %v369_v63 = vpop.permute.xlu1 %368 }
 0x2da   :  { %2701 = vmatmul.mubr.msk.f32.vlgmr.msra.gmra.mrb[8].mxu0 %vm197_vm5, %v369_v63  ;;  %2712 = vmatmul.mubr.msk.f32.vlgmr.msra.gmra.mrb[4].mxu1 %vm197_vm5, %v369_v63 }
 0x2db   :  { %2981 = vmatpush3.bf16.msra.mxu1 %v3367_v40  ;;  %2975 = vmatpush3.bf16.msra.mxu0 %v3379_v44 }
 0x2dc   :  { %2982 = vmatprep.subr.bf16.mxu1 %v3233_v0  ;;  %2976 = vmatprep.subr.bf16.mxu0 %v3233_v0 }
 0x2dd   :  { %2733 = vmatprep.mubr.msk.f32.mxu1 %vm3234_vm1, %v3235_v4  ;;  %2722 = vmatprep.mubr.msk.f32.mxu0 %vm3234_vm1, %v3235_v4 }
 0x2df   :  { %2984 = vmatpush3.bf16.msra.mxu1 %v3392_v48  ;;  %2978 = vmatpush3.bf16.msra.mxu0 %v3398_v50 }
 0x2e0   :  { %2985 = vmatprep.subr.bf16.mxu0 %v3233_v0  ;;  %2991 = vmatprep.subr.bf16.mxu1 %v3233_v0 }
 0x3ad   :  { %v438_v3 = vpop.f32.mrb[8].mxu0  ;;  %v540_v5 = vpop.f32.mrb[4].mxu1 }
 0x3ae   :  { %v439_v6 = vadd.f32 %v438_v3, %v363_v61  ;;  %v544_v7 = vadd.f32 %v540_v5, %v146_v1  ;;  %v2702_v9 = vpop.f32.mrb[9].mxu0  ;;  %v2713_v10 = vpop.f32.mrb[5].mxu1 }
 0x3b0   :  { %v448_v11 = vadd.f32 %v3454_v2, %v439_v6  ;;  %v2483_v15 = vmul.f32 -1.442695, %v544_v7 }
 0x3b2   :  { %v2481_v16 = vmul.f32 -1.442695, %v448_v11  ;;  %3112 = vpow2.f32 %v2483_v15 }
 0x3b4   :  { %3114 = vpow2.f32 %v2481_v16 }
 0x3b5   :  { %3116 = vtanh.f32 %v544_v7 }
 0x3b6   :  { %3118 = vtanh.f32 %v448_v11 }
 0x3bc   :  { %v3113_v17 = vpop.eup %3112 }
 0x3bd   :  { %v549_v14 = vadd.f32 1.0, %v3113_v17 }
 0x3be   :  { %v3115_v18 = vpop.eup %3114 }
 0x3bf   :  { %v453_v19 = vadd.f32 1.0, %v3115_v18  ;;  %3120 = vrcp.f32 %v549_v14  ;;  %v3117_v20 = vpop.eup %3116 }
 0x3c0   :  { %v3119_v21 = vpop.eup %3118 }
 0x3c1   :  { %3122 = vrcp.f32 %v453_v19 }
 0x3c9   :  { %v3121_v22 = vpop.eup %3120 }
 0x3ca   :  { %v552_v24 = vsel %vm3337_vm4, %v3117_v20, %v3121_v22 }
 0x3cb   :  { %v3123_v23 = vpop.eup %3122  ;;  %555 = vrot.lane.b32.xlu1 %v552_v24, %s3236_s25  ;;  %v553_v31 = vmul.f32 %v552_v24, %v3345_v33 }
 0x3cc   :  { %v456_v26 = vsel %vm3337_vm4, %v3119_v21, %v3123_v23 }
 0x3cd   :  { %459 = vrot.lane.b32.xlu0 %v456_v26, %s3236_s25  ;;  %v457_v34 = vmul.f32 0.0, %v456_v26 }
 0x43d   :  { %v556_v27 = vpop.permute.xlu1 %555 }
 0x43e   :  { %v558_v28 = vmul.f32 %v556_v27, %v552_v24 }
 0x43f   :  { %v460_v29 = vpop.permute.xlu0 %459 }
 0x440   :  { %v462_v30 = vmul.f32 %v460_v29, %v456_v26  ;;  %560 = vrot.lane.b32.xlu1 %v558_v28, %s3237_s26 }
 0x442   :  { %464 = vrot.lane.b32.xlu0 %v462_v30, %s3237_s26 }
 0x4b2   :  { %v561_v32 = vpop.permute.xlu1 %560 }
 0x4b3   :  { %v3466_v35 = vadd.f32 %v561_v32, %v553_v31 }
 0x4b4   :  { %v465_v36 = vpop.permute.xlu0 %464 }
 0x4b5   :  { %v3468_v37 = vadd.f32 %v465_v36, %v457_v34  ;;  %3124 = vtanh.f32 %v3466_v35 }
 0x4b7   :  { %3126 = vtanh.f32 %v3468_v37 }
 0x4bf   :  { %v3125_v38 = vpop.eup %3124 }
 0x4c0   :  { %566 = vrot.lane.b32.xlu1 %v3125_v38, %s3236_s25 }
 0x4c1   :  { %v3127_v39 = vpop.eup %3126 }
 0x4c2   :  { %470 = vrot.lane.b32.xlu0 %v3127_v39, %s3236_s25 }
 0x532   :  { %v567_v41 = vpop.permute.xlu1 %566 }
 0x533   :  { %v569_v42 = vmul.f32 %v567_v41, %v552_v24 }
 0x534   :  { %v471_v33 = vpop.permute.xlu0 %470 }
 0x535   :  { %v473_v43 = vmul.f32 %v471_v33, %v456_v26  ;;  %646 = vrot.lane.b32.xlu1 %v569_v42, %s3237_s26  ;;  %v156_v42 = vadd.f32 %v3423_v55, %v3332_v13 }
 0x537   :  { %571 = vrot.lane.b32.xlu0 %v473_v43, %s3237_s26 }
 0x5a7   :  { %v647_v45 = vpop.permute.xlu1 %646 }
 0x5a8   :  { %2734 = vmatmul.mubr.msk.f32.vlgmr.msra.gmra.mrb[6].mxu1 %vm197_vm5, %v647_v45 }
 0x5a9   :  { %v572_v46 = vpop.permute.xlu0 %571  ;;  %2993 = vmatpush3.bf16.msra.mxu1 %v3379_v44  ;;  %2755 = vmatprep.mubr.msk.f32.mxu1 %vm3234_vm1, %v3235_v4 }
 0x5aa   :  { %2723 = vmatmul.mubr.msk.f32.vlgmr.msra.gmra.mrb[10].mxu0 %vm197_vm5, %v572_v46  ;;  %2994 = vmatprep.subr.bf16.mxu1 %v3233_v0 }
 0x5ab   :  { %2987 = vmatpush3.bf16.msra.mxu0 %v3306_v8  ;;  %2744 = vmatprep.mubr.msk.f32.mxu0 %vm3234_vm1, %v3235_v4 }
 0x5ac   :  { %2988 = vmatprep.subr.bf16.mxu0 %v3233_v0 }
 0x5ad   :  { %2996 = vmatpush3.bf16.msra.mxu1 %v3398_v50 }
 0x5ae   :  { %3003 = vmatprep.subr.bf16.mxu1 %v3233_v0 }
 0x5af   :  { %2990 = vmatpush3.bf16.msra.mxu0 %v3319_v12 }
 0x5b0   :  { %2997 = vmatprep.subr.bf16.mxu0 %v3233_v0 }
 0x5b2   :  { %2745 = vmatmul.mubr.msk.f32.vlgmr.msra.gmra.mrb[12].mxu0 %vm197_vm5, %v647_v45 }
 0x5b3   :  { %2999 = vmatpush3.bf16.msra.mxu0 %v3367_v40  ;;  %2766 = vmatprep.mubr.msk.f32.mxu0 %vm3234_vm1, %v3235_v4 }
 0x5b4   :  { %3000 = vmatprep.subr.bf16.mxu0 %v3233_v0 }
 0x5b7   :  { %3002 = vmatpush3.bf16.msra.mxu0 %v3392_v48 }
 0x5b8   :  { %3009 = vmatprep.subr.bf16.mxu0 %v3233_v0 }
 0x67b   :  { %v716_v47 = vpop.f32.mrb[6].mxu1 }
 0x67c   :  { %v2735_v49 = vpop.f32.mrb[7].mxu1 }
 0x67d   :  { %v641_v51 = vpop.f32.mrb[10].mxu0 }
 0x67e   :  { %v717_v52 = vadd.f32 %v716_v47, %v641_v51  ;;  %v2724_v53 = vpop.f32.mrb[11].mxu0 }
 0x680   :  { %v720_v54 = vadd.f32 %v3454_v2, %v717_v52 }
 0x682   :  { %v2486_v61 = vmul.f32 -1.442695, %v720_v54 }
 0x684   :  { %3128 = vpow2.f32 %v2486_v61 }
 0x685   :  { %v812_v63 = vpop.f32.mrb[12].mxu0 }
 0x686   :  { %v816_v1 = vadd.f32 %v812_v63, %v151_v62  ;;  %v2746_v3 = vpop.f32.mrb[13].mxu0 }
 0x688   :  { %v2488_v5 = vmul.f32 -1.442695, %v816_v1 }
 0x68a   :  { %3130 = vpow2.f32 %v2488_v5 }
 0x68b   :  { %3132 = vtanh.f32 %v720_v54 }
 0x68e   :  { %v3129_v6 = vpop.eup %3128 }
 0x68f   :  { %v725_v7 = vadd.f32 1.0, %v3129_v6 }
 0x691   :  { %3134 = vrcp.f32 %v725_v7 }
 0x692   :  { %3136 = vtanh.f32 %v816_v1 }
 0x694   :  { %v3131_v9 = vpop.eup %3130 }
 0x695   :  { %v821_v10 = vadd.f32 1.0, %v3131_v9  ;;  %v3133_v11 = vpop.eup %3132 }
 0x697   :  { %3138 = vrcp.f32 %v821_v10 }
 0x69b   :  { %v3135_v15 = vpop.eup %3134 }
 0x69c   :  { %v728_v16 = vsel %vm3337_vm4, %v3133_v11, %v3135_v15  ;;  %v3137_v56 = vpop.eup %3136 }
 0x69d   :  { %731 = vrot.lane.b32.xlu0 %v728_v16, %s3236_s25  ;;  %v729_v22 = vmul.f32 %v728_v16, %v3468_v37 }
 0x6a1   :  { %v3139_v17 = vpop.eup %3138 }
 0x6a2   :  { %v824_v18 = vsel %vm3337_vm4, %v3137_v56, %v3139_v17 }
 0x6a3   :  { %827 = vrot.lane.b32.xlu1 %v824_v18, %s3236_s25  ;;  %v825_v26 = vmul.f32 %v824_v18, %v3466_v35 }
 0x70f   :  { %v732_v14 = vpop.permute.xlu0 %731 }
 0x710   :  { %v734_v19 = vmul.f32 %v732_v14, %v728_v16 }
 0x712   :  { %736 = vrot.lane.b32.xlu0 %v734_v19, %s3237_s26 }
 0x715   :  { %v828_v20 = vpop.permute.xlu1 %827 }
 0x716   :  { %v830_v21 = vmul.f32 %v828_v20, %v824_v18 }
 0x718   :  { %832 = vrot.lane.b32.xlu1 %v830_v21, %s3237_s26 }
 0x784   :  { %v737_v23 = vpop.permute.xlu0 %736 }
 0x785   :  { %v3509_v24 = vadd.f32 %v737_v23, %v729_v22 }
 0x787   :  { %3140 = vtanh.f32 %v3509_v24 }
 0x78a   :  { %v833_v27 = vpop.permute.xlu1 %832 }
 0x78b   :  { %v3513_v28 = vadd.f32 %v833_v27, %v825_v26 }
 0x78d   :  { %3142 = vtanh.f32 %v3513_v28 }
 0x791   :  { %v3141_v29 = vpop.eup %3140 }
 0x792   :  { %742 = vrot.lane.b32.xlu0 %v3141_v29, %s3236_s25 }
 0x797   :  { %v3143_v30 = vpop.eup %3142 }
 0x798   :  { %838 = vrot.lane.b32.xlu1 %v3143_v30, %s3236_s25 }
 0x804   :  { %v743_v31 = vpop.permute.xlu0 %742 }
 0x805   :  { %v745_v32 = vmul.f32 %v743_v31, %v728_v16 }
 0x807   :  { %843 = vrot.lane.b32.xlu0 %v745_v32, %s3237_s26 }
 0x80a   :  { %v839_v34 = vpop.permute.xlu1 %838 }
 0x80b   :  { %v841_v36 = vmul.f32 %v839_v34, %v824_v18 }
 0x80d   :  { %918 = vrot.lane.b32.xlu1 %v841_v36, %s3237_s26 }
 0x879   :  { %v844_v35 = vpop.permute.xlu0 %843 }
 0x87a   :  { %2756 = vmatmul.mubr.msk.f32.vlgmr.msra.gmra.mrb[8].mxu1 %vm197_vm5, %v844_v35  ;;  %v161_v35 = vadd.f32 %v3332_v13, %v3429_v58 }
 0x87b   :  { %3005 = vmatpush3.bf16.msra.mxu1 %v3306_v8  ;;  %2777 = vmatprep.mubr.msk.f32.mxu1 %vm3234_vm1, %v3235_v4 }
 0x87c   :  { %3006 = vmatprep.subr.bf16.mxu1 %v3233_v0 }
 0x87f   :  { %3008 = vmatpush3.bf16.msra.mxu1 %v3319_v12  ;;  %v919_v37 = vpop.permute.xlu1 %918 }
 0x880   :  { %2767 = vmatmul.mubr.msk.f32.vlgmr.msra.gmra.mrb[14].mxu0 %vm197_vm5, %v919_v37  ;;  %3015 = vmatprep.subr.bf16.mxu1 %v3233_v0 }
 0x881   :  { %3011 = vmatpush3.bf16.msra.mxu0 %v3379_v44  ;;  %2788 = vmatprep.mubr.msk.f32.mxu0 %vm3234_vm1, %v3235_v4 }
 0x882   :  { %2778 = vmatmul.mubr.msk.f32.vlgmr.msra.gmra.mrb[10].mxu1 %vm197_vm5, %v919_v37  ;;  %3012 = vmatprep.subr.bf16.mxu0 %v3233_v0 }
 0x883   :  { %3017 = vmatpush3.bf16.msra.mxu1 %v3367_v40  ;;  %2799 = vmatprep.mubr.msk.f32.mxu1 %vm3234_vm1, %v3235_v4 }
 0x884   :  { %3018 = vmatprep.subr.bf16.mxu1 %v3233_v0 }
 0x885   :  { %3014 = vmatpush3.bf16.msra.mxu0 %v3398_v50 }
 0x886   :  { %3021 = vmatprep.subr.bf16.mxu0 %v3233_v0 }
 0x887   :  { %3020 = vmatpush3.bf16.msra.mxu1 %v3392_v48 }
 0x888   :  { %3027 = vmatprep.subr.bf16.mxu1 %v3233_v0 }
 0x94d   :  { %v913_v38 = vpop.f32.mrb[8].mxu1 }
 0x94e   :  { %v2757_v39 = vpop.f32.mrb[9].mxu1 }
 0x953   :  { %v988_v41 = vpop.f32.mrb[14].mxu0 }
 0x954   :  { %v989_v33 = vadd.f32 %v988_v41, %v913_v38  ;;  %v2768_v43 = vpop.f32.mrb[15].mxu0 }
 0x955   :  { %v1084_v45 = vpop.f32.mrb[10].mxu1 }
 0x956   :  { %v992_v46 = vadd.f32 %v3454_v2, %v989_v33  ;;  %v1088_v47 = vadd.f32 %v1084_v45, %v156_v42  ;;  %v2779_v49 = vpop.f32.mrb[11].mxu1 }
 0x958   :  { %v2491_v51 = vmul.f32 -1.442695, %v992_v46  ;;  %v2493_v52 = vmul.f32 -1.442695, %v1088_v47 }
 0x95a   :  { %3144 = vpow2.f32 %v2491_v51 }
 0x95b   :  { %3146 = vpow2.f32 %v2493_v52 }
 0x95c   :  { %3148 = vtanh.f32 %v992_v46 }
 0x95d   :  { %3150 = vtanh.f32 %v1088_v47 }
 0x964   :  { %v3145_v53 = vpop.eup %3144 }
 0x965   :  { %v3147_v54 = vpop.eup %3146  ;;  %v997_v61 = vadd.f32 1.0, %v3145_v53 }
 0x966   :  { %v1093_v62 = vadd.f32 1.0, %v3147_v54  ;;  %v3149_v55 = vpop.eup %3148 }
 0x967   :  { %3152 = vrcp.f32 %v997_v61  ;;  %v3151_v63 = vpop.eup %3150 }
 0x968   :  { %3154 = vrcp.f32 %v1093_v62 }
 0x971   :  { %v3153_v1 = vpop.eup %3152 }
 0x972   :  { %v3155_v3 = vpop.eup %3154  ;;  %v1000_v5 = vsel %vm3337_vm4, %v3149_v55, %v3153_v1 }
 0x973   :  { %v1096_v6 = vsel %vm3337_vm4, %v3151_v63, %v3155_v3  ;;  %1003 = vrot.lane.b32.xlu0 %v1000_v5, %s3236_s25  ;;  %v1001_v15 = vmul.f32 %v1000_v5, %v3509_v24 }
 0x974   :  { %1099 = vrot.lane.b32.xlu1 %v1096_v6, %s3236_s25  ;;  %v1097_v16 = vmul.f32 %v1096_v6, %v3513_v28 }
 0x9e5   :  { %v1004_v7 = vpop.permute.xlu0 %1003 }
 0x9e6   :  { %v1100_v9 = vpop.permute.xlu1 %1099  ;;  %v1006_v10 = vmul.f32 %v1004_v7, %v1000_v5 }
 0x9e7   :  { %v1102_v11 = vmul.f32 %v1100_v9, %v1096_v6 }
 0x9e8   :  { %1008 = vrot.lane.b32.xlu0 %v1006_v10, %s3237_s26 }
 0x9e9   :  { %1104 = vrot.lane.b32.xlu1 %v1102_v11, %s3237_s26 }
 0xa5a   :  { %v1009_v56 = vpop.permute.xlu0 %1008 }
 0xa5b   :  { %v1105_v17 = vpop.permute.xlu1 %1104  ;;  %v3554_v18 = vadd.f32 %v1009_v56, %v1001_v15 }
 0xa5c   :  { %v3556_v14 = vadd.f32 %v1105_v17, %v1097_v16 }
 0xa5d   :  { %3156 = vtanh.f32 %v3554_v18 }
 0xa5e   :  { %3158 = vtanh.f32 %v3556_v14 }
 0xa67   :  { %v3157_v19 = vpop.eup %3156 }
 0xa68   :  { %v3159_v20 = vpop.eup %3158  ;;  %1014 = vrot.lane.b32.xlu0 %v3157_v19, %s3236_s25 }
 0xa69   :  { %1110 = vrot.lane.b32.xlu1 %v3159_v20, %s3236_s25 }
 0xada   :  { %v1015_v21 = vpop.permute.xlu0 %1014 }
 0xadb   :  { %v1111_v22 = vpop.permute.xlu1 %1110  ;;  %v1017_v23 = vmul.f32 %v1015_v21, %v1000_v5 }
 0xadc   :  { %v1113_v24 = vmul.f32 %v1111_v22, %v1096_v6  ;;  %v166_v22 = vadd.f32 %v3427_v57, %v3332_v13 }
 0xadd   :  { %1115 = vrot.lane.b32.xlu0 %v1017_v23, %s3237_s26 }
 0xade   :  { %1190 = vrot.lane.b32.xlu1 %v1113_v24, %s3237_s26 }
 0xb4f   :  { %v1116_v26 = vpop.permute.xlu0 %1115 }
 0xb50   :  { %v1191_v27 = vpop.permute.xlu1 %1190  ;;  %2789 = vmatmul.mubr.msk.f32.vlgmr.msra.gmra.mrb[16].mxu0 %vm197_vm5, %v1116_v26 }
 0xb51   :  { %2800 = vmatmul.mubr.msk.f32.vlgmr.msra.gmra.mrb[12].mxu1 %vm197_vm5, %v1191_v27  ;;  %3023 = vmatpush3.bf16.msra.mxu0 %v3306_v8 }
 0xb52   :  { %3024 = vmatprep.subr.bf16.mxu0 %v3233_v0  ;;  %2810 = vmatprep.mubr.msk.f32.mxu0 %vm3234_vm1, %v3235_v4 }
 0xb53   :  { %3029 = vmatpush3.bf16.msra.mxu1 %v3379_v44  ;;  %2821 = vmatprep.mubr.msk.f32.mxu1 %vm3234_vm1, %v3235_v4 }
 0xb54   :  { %3030 = vmatprep.subr.bf16.mxu1 %v3233_v0 }
 0xb55   :  { %3026 = vmatpush3.bf16.msra.mxu0 %v3319_v12 }
 0xb56   :  { %3033 = vmatprep.subr.bf16.mxu0 %v3233_v0 }
 0xb57   :  { %3032 = vmatpush3.bf16.msra.mxu1 %v3398_v50 }
 0xb58   :  { %2811 = vmatmul.mubr.msk.f32.vlgmr.msra.gmra.mrb[18].mxu0 %vm197_vm5, %v1191_v27  ;;  %3039 = vmatprep.subr.bf16.mxu1 %v3233_v0 }
 0xb59   :  { %3035 = vmatpush3.bf16.msra.mxu0 %v3367_v40  ;;  %2832 = vmatprep.mubr.msk.f32.mxu0 %vm3234_vm1, %v3235_v4 }
 0xb5a   :  { %3036 = vmatprep.subr.bf16.mxu0 %v3233_v0 }
 0xb5d   :  { %3038 = vmatpush3.bf16.msra.mxu0 %v3392_v48 }
 0xb5e   :  { %3045 = vmatprep.subr.bf16.mxu0 %v3233_v0 }
 0xc23   :  { %v1185_v28 = vpop.f32.mrb[16].mxu0 }
 0xc24   :  { %v1260_v29 = vpop.f32.mrb[12].mxu1  ;;  %v2790_v30 = vpop.f32.mrb[17].mxu0 }
 0xc25   :  { %v1261_v31 = vadd.f32 %v1260_v29, %v1185_v28  ;;  %v2801_v32 = vpop.f32.mrb[13].mxu1 }
 0xc27   :  { %v1264_v34 = vadd.f32 %v3454_v2, %v1261_v31 }
 0xc29   :  { %v2496_v36 = vmul.f32 -1.442695, %v1264_v34 }
 0xc2b   :  { %3160 = vpow2.f32 %v2496_v36  ;;  %v1356_v37 = vpop.f32.mrb[18].mxu0 }
 0xc2c   :  { %v1360_v38 = vadd.f32 %v1356_v37, %v161_v35  ;;  %v2812_v39 = vpop.f32.mrb[19].mxu0 }
 0xc2e   :  { %v2498_v41 = vmul.f32 -1.442695, %v1360_v38 }
 0xc30   :  { %3162 = vpow2.f32 %v2498_v41 }
 0xc31   :  { %3164 = vtanh.f32 %v1264_v34 }
 0xc35   :  { %v3161_v42 = vpop.eup %3160 }
 0xc36   :  { %v1269_v33 = vadd.f32 1.0, %v3161_v42 }
 0xc38   :  { %3166 = vrcp.f32 %v1269_v33 }
 0xc39   :  { %3168 = vtanh.f32 %v1360_v38 }
 0xc3a   :  { %v3163_v43 = vpop.eup %3162 }
 0xc3b   :  { %v1365_v45 = vadd.f32 1.0, %v3163_v43  ;;  %v3165_v46 = vpop.eup %3164 }
 0xc3d   :  { %3170 = vrcp.f32 %v1365_v45 }
 0xc42   :  { %v3167_v47 = vpop.eup %3166 }
 0xc43   :  { %v1272_v49 = vsel %vm3337_vm4, %v3165_v46, %v3167_v47  ;;  %v3169_v58 = vpop.eup %3168 }
 0xc44   :  { %1275 = vrot.lane.b32.xlu0 %v1272_v49, %s3236_s25  ;;  %v1273_v55 = vmul.f32 %v1272_v49, %v3554_v18 }
 0xc47   :  { %v3171_v51 = vpop.eup %3170 }
 0xc48   :  { %v1368_v52 = vsel %vm3337_vm4, %v3169_v58, %v3171_v51 }
 0xc49   :  { %1371 = vrot.lane.b32.xlu1 %v1368_v52, %s3236_s25  ;;  %v1369_v3 = vmul.f32 %v1368_v52, %v3556_v14 }
 0xcb6   :  { %v1276_v53 = vpop.permute.xlu0 %1275 }
 0xcb7   :  { %v1278_v54 = vmul.f32 %v1276_v53, %v1272_v49 }
 0xcb9   :  { %1280 = vrot.lane.b32.xlu0 %v1278_v54, %s3237_s26 }
 0xcbb   :  { %v1372_v61 = vpop.permute.xlu1 %1371 }
 0xcbc   :  { %v1374_v62 = vmul.f32 %v1372_v61, %v1368_v52 }
 0xcbe   :  { %1376 = vrot.lane.b32.xlu1 %v1374_v62, %s3237_s26 }
 0xd2b   :  { %v1281_v63 = vpop.permute.xlu0 %1280 }
 0xd2c   :  { %v3597_v1 = vadd.f32 %v1281_v63, %v1273_v55 }
 0xd2e   :  { %3172 = vtanh.f32 %v3597_v1 }
 0xd30   :  { %v1377_v5 = vpop.permute.xlu1 %1376 }
 0xd31   :  { %v3601_v6 = vadd.f32 %v1377_v5, %v1369_v3 }
 0xd33   :  { %3174 = vtanh.f32 %v3601_v6 }
 0xd38   :  { %v3173_v7 = vpop.eup %3172 }
 0xd39   :  { %1286 = vrot.lane.b32.xlu0 %v3173_v7, %s3236_s25 }
 0xd3d   :  { %v3175_v9 = vpop.eup %3174 }
 0xd3e   :  { %1382 = vrot.lane.b32.xlu1 %v3175_v9, %s3236_s25 }
 0xdab   :  { %v1287_v10 = vpop.permute.xlu0 %1286 }
 0xdac   :  { %v1289_v11 = vmul.f32 %v1287_v10, %v1272_v49 }
 0xdae   :  { %1387 = vrot.lane.b32.xlu0 %v1289_v11, %s3237_s26 }
 0xdb0   :  { %v1383_v15 = vpop.permute.xlu1 %1382 }
 0xdb1   :  { %v1385_v16 = vmul.f32 %v1383_v15, %v1368_v52  ;;  %v171_v15 = vadd.f32 %v3332_v13, %v3433_v60 }
 0xdb3   :  { %1462 = vrot.lane.b32.xlu1 %v1385_v16, %s3237_s26 }
 0xe20   :  { %v1388_v56 = vpop.permute.xlu0 %1387 }
 0xe21   :  { %2822 = vmatmul.mubr.msk.f32.vlgmr.msra.gmra.mrb[14].mxu1 %vm197_vm5, %v1388_v56 }
 0xe22   :  { %3041 = vmatpush3.bf16.msra.mxu1 %v3306_v8  ;;  %2843 = vmatprep.mubr.msk.f32.mxu1 %vm3234_vm1, %v3235_v4 }
 0xe23   :  { %3042 = vmatprep.subr.bf16.mxu1 %v3233_v0 }
 0xe25   :  { %v1463_v17 = vpop.permute.xlu1 %1462 }
 0xe26   :  { %3044 = vmatpush3.bf16.msra.mxu1 %v3319_v12  ;;  %2833 = vmatmul.mubr.msk.f32.vlgmr.msra.gmra.mrb[20].mxu0 %vm197_vm5, %v1463_v17 }
 0xe27   :  { %3047 = vmatpush3.bf16.msra.mxu0 %v3379_v44  ;;  %3051 = vmatprep.subr.bf16.mxu1 %v3233_v0 }
 0xe28   :  { %3048 = vmatprep.subr.bf16.mxu0 %v3233_v0  ;;  %2854 = vmatprep.mubr.msk.f32.mxu0 %vm3234_vm1, %v3235_v4 }
 0xe29   :  { %2844 = vmatmul.mubr.msk.f32.vlgmr.msra.gmra.mrb[16].mxu1 %vm197_vm5, %v1463_v17 }
 0xe2a   :  { %3053 = vmatpush3.bf16.msra.mxu1 %v3367_v40  ;;  %2865 = vmatprep.mubr.msk.f32.mxu1 %vm3234_vm1, %v3235_v4 }
 0xe2b   :  { %3050 = vmatpush3.bf16.msra.mxu0 %v3398_v50  ;;  %3054 = vmatprep.subr.bf16.mxu1 %v3233_v0 }
 0xe2c   :  { %3057 = vmatprep.subr.bf16.mxu0 %v3233_v0 }
 0xe2e   :  { %3056 = vmatpush3.bf16.msra.mxu1 %v3392_v48 }
 0xe2f   :  { %3063 = vmatprep.subr.bf16.mxu1 %v3233_v0 }
 0xef4   :  { %v1457_v18 = vpop.f32.mrb[14].mxu1 }
 0xef5   :  { %v2823_v14 = vpop.f32.mrb[15].mxu1 }
 0xef9   :  { %v1532_v19 = vpop.f32.mrb[20].mxu0 }
 0xefa   :  { %v1533_v20 = vadd.f32 %v1532_v19, %v1457_v18  ;;  %v2834_v21 = vpop.f32.mrb[21].mxu0 }
 0xefc   :  { %v1536_v23 = vadd.f32 %v3454_v2, %v1533_v20  ;;  %v1628_v24 = vpop.f32.mrb[16].mxu1 }
 0xefd   :  { %v1632_v26 = vadd.f32 %v1628_v24, %v166_v22  ;;  %v2845_v27 = vpop.f32.mrb[17].mxu1 }
 0xefe   :  { %v2501_v28 = vmul.f32 -1.442695, %v1536_v23 }
 0xeff   :  { %v2503_v29 = vmul.f32 -1.442695, %v1632_v26 }
 0xf00   :  { %3176 = vpow2.f32 %v2501_v28 }
 0xf01   :  { %3178 = vpow2.f32 %v2503_v29 }
 0xf02   :  { %3180 = vtanh.f32 %v1536_v23 }
 0xf03   :  { %3182 = vtanh.f32 %v1632_v26 }
 0xf0a   :  { %v3177_v30 = vpop.eup %3176 }
 0xf0b   :  { %v3179_v31 = vpop.eup %3178  ;;  %v1541_v32 = vadd.f32 1.0, %v3177_v30 }
 0xf0c   :  { %v1637_v34 = vadd.f32 1.0, %v3179_v31  ;;  %v3181_v36 = vpop.eup %3180 }
 0xf0d   :  { %3184 = vrcp.f32 %v1541_v32  ;;  %v3183_v35 = vpop.eup %3182 }
 0xf0e   :  { %3186 = vrcp.f32 %v1637_v34 }
 0xf17   :  { %v3185_v57 = vpop.eup %3184 }
 0xf18   :  { %v3187_v37 = vpop.eup %3186  ;;  %v1544_v38 = vsel %vm3337_vm4, %v3181_v36, %v3185_v57 }
 0xf19   :  { %v1640_v39 = vsel %vm3337_vm4, %v3183_v35, %v3187_v37  ;;  %1547 = vrot.lane.b32.xlu0 %v1544_v38, %s3236_s25  ;;  %v1545_v45 = vmul.f32 %v1544_v38, %v3597_v1 }
 0xf1a   :  { %1643 = vrot.lane.b32.xlu1 %v1640_v39, %s3236_s25  ;;  %v1641_v46 = vmul.f32 %v1640_v39, %v3601_v6 }
 0xf8b   :  { %v1548_v41 = vpop.permute.xlu0 %1547 }
 0xf8c   :  { %v1644_v42 = vpop.permute.xlu1 %1643  ;;  %v1550_v33 = vmul.f32 %v1548_v41, %v1544_v38 }
 0xf8d   :  { %v1646_v43 = vmul.f32 %v1644_v42, %v1640_v39 }
 0xf8e   :  { %1552 = vrot.lane.b32.xlu0 %v1550_v33, %s3237_s26 }
 0xf8f   :  { %1648 = vrot.lane.b32.xlu1 %v1646_v43, %s3237_s26 }
0x1000   :  { %v1553_v47 = vpop.permute.xlu0 %1552 }
0x1001   :  { %v1649_v49 = vpop.permute.xlu1 %1648  ;;  %v3642_v58 = vadd.f32 %v1553_v47, %v1545_v45 }
0x1002   :  { %v3644_v51 = vadd.f32 %v1649_v49, %v1641_v46 }
0x1003   :  { %3188 = vtanh.f32 %v3642_v58 }
0x1004   :  { %3190 = vtanh.f32 %v3644_v51 }
0x100d   :  { %v3189_v52 = vpop.eup %3188 }
0x100e   :  { %v3191_v53 = vpop.eup %3190  ;;  %1558 = vrot.lane.b32.xlu0 %v3189_v52, %s3236_s25 }
0x100f   :  { %1654 = vrot.lane.b32.xlu1 %v3191_v53, %s3236_s25 }
0x1080   :  { %v1559_v54 = vpop.permute.xlu0 %1558 }
0x1081   :  { %v1655_v61 = vpop.permute.xlu1 %1654  ;;  %v1561_v62 = vmul.f32 %v1559_v54, %v1544_v38 }
0x1082   :  { %v1657_v55 = vmul.f32 %v1655_v61, %v1640_v39 }
0x1083   :  { %1659 = vrot.lane.b32.xlu0 %v1561_v62, %s3237_s26 }
0x1084   :  { %1734 = vrot.lane.b32.xlu1 %v1657_v55, %s3237_s26 }
0x10f5   :  { %v1660_v63 = vpop.permute.xlu0 %1659 }
0x10f6   :  { %v1735_v1 = vpop.permute.xlu1 %1734  ;;  %2855 = vmatmul.mubr.msk.f32.vlgmr.msra.gmra.mrb[22].mxu0 %vm197_vm5, %v1660_v63 }
0x10f7   :  { %2866 = vmatmul.mubr.msk.f32.vlgmr.msra.gmra.mrb[18].mxu1 %vm197_vm5, %v1735_v1  ;;  %3059 = vmatpush3.bf16.msra.mxu0 %v3306_v8 }
0x10f8   :  { %3060 = vmatprep.subr.bf16.mxu0 %v3233_v0  ;;  %2876 = vmatprep.mubr.msk.f32.mxu0 %vm3234_vm1, %v3235_v4 }
0x10f9   :  { %3065 = vmatpush3.bf16.msra.mxu1 %v3379_v44  ;;  %2887 = vmatprep.mubr.msk.f32.mxu1 %vm3234_vm1, %v3235_v4 }
0x10fa   :  { %3066 = vmatprep.subr.bf16.mxu1 %v3233_v0 }
0x10fb   :  { %3062 = vmatpush3.bf16.msra.mxu0 %v3319_v12 }
0x10fc   :  { %3069 = vmatprep.subr.bf16.mxu0 %v3233_v0 }
0x10fd   :  { %3068 = vmatpush3.bf16.msra.mxu1 %v3398_v50 }
0x10fe   :  { %2877 = vmatmul.mubr.msk.f32.vlgmr.msra.gmra.mrb[24].mxu0 %vm197_vm5, %v1735_v1  ;;  %3075 = vmatprep.subr.bf16.mxu1 %v3233_v0 }
0x10ff   :  { %3071 = vmatpush3.bf16.msra.mxu0 %v3367_v40  ;;  %2898 = vmatprep.mubr.msk.f32.mxu0 %vm3234_vm1, %v3235_v4 }
0x1100   :  { %3072 = vmatprep.subr.bf16.mxu0 %v3233_v0 }
0x1103   :  { %3074 = vmatpush3.bf16.msra.mxu0 %v3392_v48 }
0x1104   :  { %3081 = vmatprep.subr.bf16.mxu0 %v3233_v0 }
0x11c9   :  { %v1729_v3 = vpop.f32.mrb[22].mxu0 }
0x11ca   :  { %v1804_v5 = vpop.f32.mrb[18].mxu1  ;;  %v2856_v6 = vpop.f32.mrb[23].mxu0 }
0x11cb   :  { %v1805_v7 = vadd.f32 %v1804_v5, %v1729_v3  ;;  %v2867_v9 = vpop.f32.mrb[19].mxu1 }
0x11cd   :  { %v1808_v10 = vadd.f32 %v3454_v2, %v1805_v7 }
0x11cf   :  { %v2506_v11 = vmul.f32 -1.442695, %v1808_v10 }
0x11d1   :  { %3192 = vpow2.f32 %v2506_v11  ;;  %v1900_v16 = vpop.f32.mrb[24].mxu0 }
0x11d2   :  { %v1904_v56 = vadd.f32 %v1900_v16, %v171_v15  ;;  %v2878_v17 = vpop.f32.mrb[25].mxu0 }
0x11d4   :  { %v2508_v18 = vmul.f32 -1.442695, %v1904_v56 }
0x11d6   :  { %3194 = vpow2.f32 %v2508_v18 }
0x11d7   :  { %3196 = vtanh.f32 %v1808_v10 }
0x11db   :  { %v3193_v14 = vpop.eup %3192 }
0x11dc   :  { %v1813_v19 = vadd.f32 1.0, %v3193_v14 }
0x11de   :  { %3198 = vrcp.f32 %v1813_v19 }
0x11df   :  { %3200 = vtanh.f32 %v1904_v56 }
0x11e0   :  { %v3195_v20 = vpop.eup %3194 }
0x11e1   :  { %v1909_v21 = vadd.f32 1.0, %v3195_v20  ;;  %v3197_v22 = vpop.eup %3196 }
0x11e3   :  { %3202 = vrcp.f32 %v1909_v21 }
0x11e8   :  { %v3199_v23 = vpop.eup %3198 }
0x11e9   :  { %v1816_v24 = vsel %vm3337_vm4, %v3197_v22, %v3199_v23  ;;  %v3201_v13 = vpop.eup %3200 }
0x11ea   :  { %1819 = vrot.lane.b32.xlu0 %v1816_v24, %s3236_s25  ;;  %v1817_v31 = vmul.f32 %v1816_v24, %v3642_v58 }
0x11ed   :  { %v3203_v60 = vpop.eup %3202 }
0x11ee   :  { %v1912_v26 = vsel %vm3337_vm4, %v3201_v13, %v3203_v60 }
0x11ef   :  { %1915 = vrot.lane.b32.xlu1 %v1912_v26, %s3236_s25  ;;  %v1913_v36 = vmul.f32 %v1912_v26, %v3644_v51 }
0x125c   :  { %v1820_v27 = vpop.permute.xlu0 %1819 }
0x125d   :  { %v1822_v28 = vmul.f32 %v1820_v27, %v1816_v24 }
0x125f   :  { %1824 = vrot.lane.b32.xlu0 %v1822_v28, %s3237_s26 }
0x1261   :  { %v1916_v29 = vpop.permute.xlu1 %1915 }
0x1262   :  { %v1918_v30 = vmul.f32 %v1916_v29, %v1912_v26 }
0x1264   :  { %1920 = vrot.lane.b32.xlu1 %v1918_v30, %s3237_s26 }
0x12d1   :  { %v1825_v32 = vpop.permute.xlu0 %1824 }
0x12d2   :  { %v3685_v34 = vadd.f32 %v1825_v32, %v1817_v31 }
0x12d4   :  { %3204 = vtanh.f32 %v3685_v34 }
0x12d6   :  { %v1921_v35 = vpop.permute.xlu1 %1920 }
0x12d7   :  { %v3689_v57 = vadd.f32 %v1921_v35, %v1913_v36 }
0x12d9   :  { %3206 = vtanh.f32 %v3689_v57 }
0x12de   :  { %v3205_v37 = vpop.eup %3204 }
0x12df   :  { %1830 = vrot.lane.b32.xlu0 %v3205_v37, %s3236_s25 }
0x12e3   :  { %v3207_v38 = vpop.eup %3206 }
0x12e4   :  { %1926 = vrot.lane.b32.xlu1 %v3207_v38, %s3236_s25 }
0x1351   :  { %v1831_v39 = vpop.permute.xlu0 %1830 }
0x1352   :  { %v1833_v41 = vmul.f32 %v1831_v39, %v1816_v24 }
0x1354   :  { %1931 = vrot.lane.b32.xlu0 %v1833_v41, %s3237_s26 }
0x1356   :  { %v1927_v42 = vpop.permute.xlu1 %1926 }
0x1357   :  { %v1929_v33 = vmul.f32 %v1927_v42, %v1912_v26  ;;  %v2378_v42 = vld [vmem:[%s3773_s7] sm:$0xff] }
0x1359   :  { %2006 = vrot.lane.b32.xlu1 %v1929_v33, %s3237_s26  ;;  %v2379_v33 = vld [vmem:[%s3773_s7 + $0x8] sm:$0xff] }
0x13c6   :  { %v1932_v43 = vpop.permute.xlu0 %1931 }
0x13c7   :  { %2888 = vmatmul.mubr.msk.f32.vlgmr.msra.gmra.mrb[20].mxu1 %vm197_vm5, %v1932_v43  ;;  %v3094_v43 = vpack.c.bf16 %v2379_v33, %v2378_v42 }
0x13c8   :  { %3077 = vmatpush3.bf16.msra.mxu1 %v3306_v8  ;;  %2909 = vmatprep.mubr.msk.f32.mxu1 %vm3234_vm1, %v3235_v4 }
0x13c9   :  { %3078 = vmatprep.subr.bf16.mxu1 %v3233_v0 }
0x13cb   :  { %v2007_v45 = vpop.permute.xlu1 %2006 }
0x13cc   :  { %3080 = vmatpush3.bf16.msra.mxu1 %v3319_v12  ;;  %2899 = vmatmul.mubr.msk.f32.vlgmr.msra.gmra.mrb[26].mxu0 %vm197_vm5, %v2007_v45 }
0x13cd   :  { %3087 = vmatprep.subr.bf16.mxu1 %v3233_v0  ;;  %3083 = vmatpush3.bf16.msra.mxu0 %v3379_v44 }
0x13ce   :  { %3084 = vmatprep.subr.bf16.mxu0 %v3233_v0  ;;  %2920 = vmatprep.mubr.msk.f32.mxu0 %vm3234_vm1, %v3235_v4 }
0x13cf   :  { %2910 = vmatmul.mubr.msk.f32.vlgmr.msra.gmra.mrb[22].mxu1 %vm197_vm5, %v2007_v45  ;;  %v2381_v45 = vld [vmem:[%s3773_s7 + $0x18] sm:$0xff] }
0x13d0   :  { %3089 = vmatpush3.bf16.msra.mxu1 %v3367_v40  ;;  %2931 = vmatprep.mubr.msk.f32.mxu1 %vm3234_vm1, %v3235_v4  ;;  %v3232_v40 = vld [vmem:[%s3769_s3] ss:$0 sm:$0xff] }
0x13d1   :  { %3090 = vmatprep.subr.bf16.mxu1 %v3233_v0  ;;  %3086 = vmatpush3.bf16.msra.mxu0 %v3398_v50  ;;  %v176_v49 = vadd.f32 %v3232_v40, %v3431_v59  ;;  %v2517_v40 = vld [vmem:[%s3774_s8] ss:$0 sm:$0xff] }
0x13d2   :  { %3093 = vmatprep.subr.bf16.mxu0 %v3233_v0 }
0x13d4   :  { %3092 = vmatpush3.bf16.msra.mxu1 %v3392_v48 }
0x149a   :  { %v2001_v8 = vpop.f32.mrb[20].mxu1 }
0x149b   :  { %v2889_v12 = vpop.f32.mrb[21].mxu1 }
0x149f   :  { %v2076_v44 = vpop.f32.mrb[26].mxu0 }
0x14a0   :  { %v2077_v46 = vadd.f32 %v2076_v44, %v2001_v8  ;;  %v2900_v47 = vpop.f32.mrb[27].mxu0  ;;  %v3097_v8 = vpack.c.bf16 %v2381_v45, %v2380_v25 }
0x14a2   :  { %v2080_v58 = vadd.f32 %v3454_v2, %v2077_v46  ;;  %v2172_v51 = vpop.f32.mrb[22].mxu1 }
0x14a3   :  { %v2176_v52 = vadd.f32 %v2172_v51, %v176_v49  ;;  %v2911_v50 = vpop.f32.mrb[23].mxu1 }
0x14a4   :  { %v2511_v53 = vmul.f32 -1.442695, %v2080_v58 }
0x14a5   :  { %v2513_v54 = vmul.f32 -1.442695, %v2176_v52 }
0x14a6   :  { %3208 = vpow2.f32 %v2511_v53 }
0x14a7   :  { %3210 = vpow2.f32 %v2513_v54 }
0x14a8   :  { %3212 = vtanh.f32 %v2080_v58 }
0x14a9   :  { %3214 = vtanh.f32 %v2176_v52 }
0x14b0   :  { %v3209_v48 = vpop.eup %3208 }
0x14b1   :  { %v3211_v61 = vpop.eup %3210  ;;  %v2085_v62 = vadd.f32 1.0, %v3209_v48 }
0x14b2   :  { %v2181_v55 = vadd.f32 1.0, %v3211_v61  ;;  %v3213_v63 = vpop.eup %3212 }
0x14b3   :  { %3216 = vrcp.f32 %v2085_v62  ;;  %v3215_v1 = vpop.eup %3214 }
0x14b4   :  { %3218 = vrcp.f32 %v2181_v55 }
0x14bd   :  { %v3217_v59 = vpop.eup %3216 }
0x14be   :  { %v3219_v3 = vpop.eup %3218  ;;  %v2088_v5 = vsel %vm3337_vm4, %v3213_v63, %v3217_v59 }
0x14bf   :  { %v2184_v6 = vsel %vm3337_vm4, %v3215_v1, %v3219_v3  ;;  %2091 = vrot.lane.b32.xlu0 %v2088_v5, %s3236_s25  ;;  %v2089_v15 = vmul.f32 %v2088_v5, %v3685_v34 }
0x14c0   :  { %2187 = vrot.lane.b32.xlu1 %v2184_v6, %s3236_s25  ;;  %v2185_v16 = vmul.f32 %v2184_v6, %v3689_v57 }
0x1531   :  { %v2092_v7 = vpop.permute.xlu0 %2091 }
0x1532   :  { %v2188_v9 = vpop.permute.xlu1 %2187  ;;  %v2094_v10 = vmul.f32 %v2092_v7, %v2088_v5 }
0x1533   :  { %v2190_v11 = vmul.f32 %v2188_v9, %v2184_v6 }
0x1534   :  { %2096 = vrot.lane.b32.xlu0 %v2094_v10, %s3237_s26 }
0x1535   :  { %2192 = vrot.lane.b32.xlu1 %v2190_v11, %s3237_s26 }
0x15a6   :  { %v2097_v56 = vpop.permute.xlu0 %2096 }
0x15a7   :  { %v2193_v17 = vpop.permute.xlu1 %2192  ;;  %v2099_v18 = vadd.f32 %v2097_v56, %v2089_v15 }
0x15a8   :  { %v2195_v14 = vadd.f32 %v2193_v17, %v2185_v16 }
0x15a9   :  { %3220 = vtanh.f32 %v2099_v18 }
0x15aa   :  { %3222 = vtanh.f32 %v2195_v14 }
0x15b3   :  { %v3221_v19 = vpop.eup %3220 }
0x15b4   :  { %v3223_v20 = vpop.eup %3222  ;;  %2102 = vrot.lane.b32.xlu0 %v3221_v19, %s3236_s25 }
0x15b5   :  { %2198 = vrot.lane.b32.xlu1 %v3223_v20, %s3236_s25 }
0x1626   :  { %v2103_v21 = vpop.permute.xlu0 %2102 }
0x1627   :  { %v2199_v22 = vpop.permute.xlu1 %2198  ;;  %v2105_v23 = vmul.f32 %v2103_v21, %v2088_v5 }
0x1628   :  { %v2201_v24 = vmul.f32 %v2199_v22, %v2184_v6 }
0x1629   :  { %2203 = vrot.lane.b32.xlu0 %v2105_v23, %s3237_s26 }
0x162a   :  { %2278 = vrot.lane.b32.xlu1 %v2201_v24, %s3237_s26 }
0x169b   :  { %v2204_v13 = vpop.permute.xlu0 %2203 }
0x169c   :  { %v2279_v60 = vpop.permute.xlu1 %2278  ;;  %2921 = vmatmul.mubr.msk.f32.vlgmr.msra.gmra.mrb[28].mxu0 %vm197_vm5, %v2204_v13 }
0x169d   :  { %2932 = vmatmul.mubr.msk.f32.vlgmr.msra.gmra.mrb[24].mxu1 %vm197_vm5, %v2279_v60  ;;  %2942 = vmatprep.mubr.msk.f32.mxu0 %vm3234_vm1, %v3235_v4 }
0x169e   :  { %3095 = vmatpush3.bf16.msra.mxu0 %v3094_v43 }
0x169f   :  { %3096 = vmatprep.subr.bf16.mxu0 %v3233_v0 }
0x16a2   :  { %3098 = vmatpush3.bf16.msra.mxu0 %v3097_v8 }
0x176f   :  { %v2273_v26 = vpop.f32.mrb[28].mxu0 }
0x1770   :  { %v2348_v27 = vpop.f32.mrb[24].mxu1  ;;  %v2922_v28 = vpop.f32.mrb[29].mxu0 }
0x1771   :  { %v2349_v29 = vadd.f32 %v2348_v27, %v2273_v26  ;;  %v2933_v30 = vpop.f32.mrb[25].mxu1 }
0x1773   :  { %v2352_v31 = vadd.f32 %v3454_v2, %v2349_v29 }
0x1775   :  { %v2516_v32 = vmul.f32 -1.442695, %v2352_v31 }
0x1777   :  { %3224 = vpow2.f32 %v2516_v32 }
0x1778   :  { %3226 = vtanh.f32 %v2352_v31 }
0x1781   :  { %v3225_v34 = vpop.eup %3224 }
0x1782   :  { %v2357_v36 = vadd.f32 1.0, %v3225_v34  ;;  %v3227_v35 = vpop.eup %3226 }
0x1784   :  { %3228 = vrcp.f32 %v2357_v36 }
0x178e   :  { %v3229_v57 = vpop.eup %3228 }
0x178f   :  { %v2360_v37 = vsel %vm3337_vm4, %v3227_v35, %v3229_v57 }
0x1790   :  { %2363 = vrot.lane.b32.xlu0 %v2360_v37, %s3236_s25  ;;  %v2361_v39 = vmul.f32 %v2360_v37, %v2099_v18 }
0x1802   :  { %v2364_v4 = vpop.permute.xlu0 %2363 }
0x1803   :  { %v2366_v38 = vmul.f32 %v2364_v4, %v2360_v37 }
0x1805   :  { %2368 = vrot.lane.b32.xlu1 %v2366_v38, %s3237_s26 }
0x1877   :  { %v2369_v41 = vpop.permute.xlu1 %2368 }
0x1878   :  { %v2371_v2 = vadd.f32 %v2369_v41, %v2361_v39 }
0x187a   :  { %3230 = vtanh.f32 %v2371_v2 }
0x1884   :  { %v3231_v12 = vpop.eup %3230 }
0x1885   :  { %2374 = vrot.lane.b32.xlu0 %v3231_v12, %s3236_s25 }
0x18f7   :  { %v2375_v44 = vpop.permute.xlu0 %2374 }
0x18f8   :  { %v2377_v46 = vmul.f32 %v2375_v44, %v2360_v37 }
0x18fa   :  { %2390 = vrot.lane.b32.xlu1 %v2377_v46, %s3237_s26 }
0x196c   :  { %v2391_v47 = vpop.permute.xlu1 %2390 }
0x196d   :  { %2943 = vmatmul.mubr.msk.f32.vlgmr.msra.gmra.mrb[30].mxu0 %vm197_vm5, %v2391_v47 }
0x1a40   :  { %v2460_v49 = vpop.f32.mrb[30].mxu0 }
0x1a41   :  { %v2461_v58 = vadd.f32 %v2517_v40, %v2460_v49  ;;  %v2944_v51 = vpop.f32.mrb[31].mxu0 }
0x1a43   :  { %2464 = vst [vmem:[%s3775_s9] sm:$0xff] %v2461_v58 }

</bundles_post_ra>
